<compile_context>
chip_gen: v7x
topology: tpu7x:2x2x1
jax: 0.10.0
libtpu: 0.0.40
codegen_flags: <defaults>
</compile_context>

<pallas_src>
import math
import numpy as np
import jax
import jax.numpy as jnp
from jax import lax
from jax.experimental import pallas as pl
from jax.experimental.pallas import tpu as pltpu

# ---------------- config (small, deterministic) ----------------
B = 2            # batch
B_PAD = 8        # sublane-aligned batch padding used inside the kernel
S = 8            # sequence length
VOCAB = 64
D_BERT = 32      # pretrained_model.config.hidden_size
H = 16           # GRU hidden_size
NUM_LAYERS = 2
BIDIRECTIONAL = True
NUM_CLASS = 4

assert BIDIRECTIONAL, "fused kernel below is written for the bidirectional config"

H2, H4, H6 = 2 * H, 4 * H, 6 * H
D_IN0 = D_BERT       # layer-0 input width
D_IN1 = H2           # layer-1 input width (fwd|bwd of layer 0)

# Row offsets inside the single packed weight array (columns are always 6H wide).
ROW_WF0 = 0
ROW_WB0 = ROW_WF0 + D_IN0
ROW_WHH0 = ROW_WB0 + D_IN0
ROW_WF1 = ROW_WHH0 + H2
ROW_WB1 = ROW_WF1 + D_IN1
ROW_WHH1 = ROW_WB1 + D_IN1
ROW_BI0 = ROW_WHH1 + H2
ROW_BHN0 = ROW_BI0 + 1
ROW_BI1 = ROW_BHN0 + 1
ROW_BHN1 = ROW_BI1 + 1
ROW_LINW = ((ROW_BHN1 + 1 + 7) // 8) * 8      # keep lin_w sublane-aligned
ROW_LINB = ROW_LINW + H2
W_ROWS = ((ROW_LINB + 1 + 7) // 8) * 8

VMEM_SPEC = pl.BlockSpec(memory_space=pltpu.MemorySpace.VMEM)


# ---------------- fused Pallas kernel ----------------
def bert_rnn_fused_kernel(x_ref, w_ref, probs_ref, y_scr):
    """Fused 2-layer bidirectional GRU + Linear + softmax(dim=1).

    x_ref:  (S*B_PAD, D_BERT) time-major flattened input, row (t, b) = t*B_PAD + b.
    w_ref:  (W_ROWS, 6H) packed weights (see pack_weights for the row layout).
            Gate-major column layout: [r_f r_b | z_f z_b | n_f n_b], each block H.
    probs_ref (output): (B, NUM_CLASS)
    y_scr:  VMEM scratch (S*B_PAD, 2H) holding layer-0 outputs [fwd_h_t | bwd_h_t].
    """
    Bp = B_PAD

    def load_layer(row_wf, row_wb, row_whh, row_bi, row_bhn, din):
        wf = w_ref[row_wf:row_wf + din, :]          # fwd gate cols, bwd cols zeroed
        wb = w_ref[row_wb:row_wb + din, :]          # bwd gate cols, fwd cols zeroed
        whh = w_ref[row_whh:row_whh + H2, :]        # block-diagonal (2H, 6H)
        bi = w_ref[row_bi:row_bi + 1, :]            # (1, 6H) fused input biases
        bhn = w_ref[row_bhn:row_bhn + 1, :]         # (1, 6H): zeros | b_hn_f | b_hn_b
        return wf, wb, whh, bi, bhn

    def gru_layer(x, wf, wb, whh, bi, bhn, store):
        # Hoisted input-side projections (both directions, input biases folded in).
        proj_f = jnp.dot(x, wf, preferred_element_type=jnp.float32) + bi  # (S*Bp, 6H)
        proj_b = jnp.dot(x, wb, preferred_element_type=jnp.float32)       # (S*Bp, 6H)
        bhn_bc = jnp.broadcast_to(bhn, (Bp, H6))    # hoisted; zeros in rz columns
        h = jnp.zeros((Bp, H2), jnp.float32)        # [h_fwd | h_bwd] on lanes
        for t in range(S):                          # static -> fully unrolled
            # ONE recurrent matmul covers both directions; b_hn folded into the add.
            hp = jnp.dot(h, whh, preferred_element_type=jnp.float32) + bhn_bc
            # fwd consumes seq step t, bwd consumes S-1-t (sublane-aligned blocks).
            xp = (proj_f[t * Bp:(t + 1) * Bp, :]
                  + proj_b[(S - 1 - t) * Bp:(S - t) * Bp, :])
            sg = jax.nn.sigmoid(xp[:, 0:H4] + hp[:, 0:H4])   # [r_f r_b | z_f z_b]
            r = sg[:, 0:H2]
            z = sg[:, H2:H4]
            n = jnp.tanh(xp[:, H4:H6] + r * hp[:, H4:H6])    # b_in in xp, b_hn in hp
            h = (1.0 - z) * n + z * h
            if store:
                # Stream layer-0 outputs to VMEM scratch (bounds vreg live ranges).
                y_scr[t * Bp:(t + 1) * Bp, 0:H] = h[:, 0:H]              # fwd @ seq t
                y_scr[(S - 1 - t) * Bp:(S - t) * Bp, H:H2] = h[:, H:H2]  # bwd @ S-1-t
        return h

    wf0, wb0, whh0, bi0, bhn0 = load_layer(ROW_WF0, ROW_WB0, ROW_WHH0,
                                           ROW_BI0, ROW_BHN0, D_IN0)
    wf1, wb1, whh1, bi1, bhn1 = load_layer(ROW_WF1, ROW_WB1, ROW_WHH1,
                                           ROW_BI1, ROW_BHN1, D_IN1)

    gru_layer(x_ref[...], wf0, wb0, whh0, bi0, bhn0, store=True)
    # Inter-layer GRU dropout: identity (eval mode).
    h = gru_layer(y_scr[...], wf1, wb1, whh1, bi1, bhn1, store=False)

    # Head: hidden = cat(hidden[-2], hidden[-1]) is already the lane layout of h.
    lin_w = w_ref[ROW_LINW:ROW_LINW + H2, :][:, 0:NUM_CLASS]
    lin_b = w_ref[ROW_LINB:ROW_LINB + 1, :][:, 0:NUM_CLASS]
    logits = jnp.dot(h, lin_w, preferred_element_type=jnp.float32) + lin_b
    m = jnp.max(logits, axis=1, keepdims=True)
    e = jnp.exp(logits - m)
    # Exact division kept (approx reciprocal would break the 1e-5 row-sum check).
    probs = e / jnp.sum(e, axis=1, keepdims=True)
    probs_ref[...] = probs[0:B, :]


# ---------------- parameter packing: everything into ONE (W_ROWS, 6H) array ----------
def pack_weights(params):
    parts = []
    for l in range(NUM_LAYERS):
        pf = params["gru"][(l, 0)]
        pb = params["gru"][(l, 1)]
        din = pf["wir"].shape[0]
        Zi = jnp.zeros((din, H), jnp.float32)
        Zh = jnp.zeros((H, H), jnp.float32)
        # input-side weights, gate-major columns; fwd / bwd column groups zeroed out
        wf = jnp.concatenate([pf["wir"], Zi, pf["wiz"], Zi, pf["win"], Zi], axis=1)
        wb = jnp.concatenate([Zi, pb["wir"], Zi, pb["wiz"], Zi, pb["win"]], axis=1)
        # block-diagonal recurrent weights: rows 0:H contract h_fwd, rows H:2H h_bwd
        whh_f = jnp.concatenate([pf["whr"], Zh, pf["whz"], Zh, pf["whn"], Zh], axis=1)
        whh_b = jnp.concatenate([Zh, pb["whr"], Zh, pb["whz"], Zh, pb["whn"]], axis=1)
        whh = jnp.concatenate([whh_f, whh_b], axis=0)
        parts += [wf, wb, whh]

    for l in range(NUM_LAYERS):
        pf = params["gru"][(l, 0)]
        pb = params["gru"][(l, 1)]
        bi = jnp.concatenate([pf["br"], pb["br"], pf["bz"], pb["bz"],
                              pf["bin"], pb["bin"]], axis=1)                  # (1, 6H)
        bhn = jnp.concatenate([jnp.zeros((1, H4), jnp.float32),
                               pf["bhn"], pb["bhn"]], axis=1)                 # (1, 6H)
        parts += [bi, bhn]

    pad1 = ROW_LINW - (ROW_BHN1 + 1)
    if pad1:
        parts.append(jnp.zeros((pad1, H6), jnp.float32))
    parts.append(jnp.concatenate(
        [params["lin_w"], jnp.zeros((H2, H6 - NUM_CLASS), jnp.float32)], axis=1))
    parts.append(jnp.concatenate(
        [params["lin_b"], jnp.zeros((1, H6 - NUM_CLASS), jnp.float32)], axis=1))
    pad2 = W_ROWS - (ROW_LINB + 1)
    if pad2:
        parts.append(jnp.zeros((pad2, H6), jnp.float32))
    w_all = jnp.concatenate(parts, axis=0)
    assert w_all.shape == (W_ROWS, H6)
    return w_all


# ---------------- synthetic "pretrained" encoder (plain JAX glue) ----------------
# TODO(synk): real BERT self-attention stack not reproduced; deterministic
# embedding + LayerNorm stand-in supplies last_hidden_state (attention_mask unused).
def synthetic_pretrained(params, input_ids, token_type_ids, time_major=False):
    pos = params["pos_emb"][:, None, :] if time_major else params["pos_emb"][None, :, :]
    emb = params["word_emb"][input_ids] + params["type_emb"][token_type_ids] + pos
    mu = jnp.mean(emb, axis=-1, keepdims=True)
    var = jnp.var(emb, axis=-1, keepdims=True)
    h = (emb - mu) * lax.rsqrt(var + 1e-12)
    return h * params["ln_g"] + params["ln_b"]


# ---------------- full forward (single fused pallas_call) ----------------
def bert_rnn_forward(params, input_ids, attention_mask, token_type_ids):
    del attention_mask  # unused by the stand-in encoder (see TODO above)
    # Encoder evaluated directly in time-major, batch-padded layout: no float
    # transpose between XLA and the kernel; padding is applied to the tiny int ids.
    ids_t = jnp.pad(input_ids.T, ((0, 0), (0, B_PAD - B)))
    tt_t = jnp.pad(token_type_ids.T, ((0, 0), (0, B_PAD - B)))
    lhs_t = synthetic_pretrained(params, ids_t, tt_t, time_major=True)  # (S, B_PAD, D)
    x_tm = lhs_t.reshape(S * B_PAD, D_BERT).astype(jnp.float32)

    w_all = pack_weights(params)

    probs = pl.pallas_call(
        bert_rnn_fused_kernel,
        out_shape=jax.ShapeDtypeStruct((B, NUM_CLASS), jnp.float32),
        in_specs=[VMEM_SPEC, VMEM_SPEC],
        out_specs=VMEM_SPEC,
        scratch_shapes=[pltpu.VMEM((S * B_PAD, H2), jnp.float32)],
    )(x_tm, w_all)
    return probs


# ---------------- pure-JAX reference (for verification) ----------------
def gru_dir_ref(x, p):
    B_, S_, _ = x.shape
    H_ = p["whr"].shape[0]
    h = jnp.zeros((B_, H_), jnp.float32)
    outs = []
    for t in range(S_):
        x_t = x[:, t, :]
        r = jax.nn.sigmoid(x_t @ p["wir"] + h @ p["whr"] + p["br"])
        z = jax.nn.sigmoid(x_t @ p["wiz"] + h @ p["whz"] + p["bz"])
        n = jnp.tanh(x_t @ p["win"] + p["bin"] + r * (h @ p["whn"] + p["bhn"]))
        h = (1.0 - z) * n + z * h
        outs.append(h)
    return jnp.stack(outs, axis=1), h


def bert_rnn_forward_ref(params, input_ids, attention_mask, token_type_ids):
    del attention_mask
    lhs = synthetic_pretrained(params, input_ids, token_type_ids, time_major=False)
    num_dirs = 2 if BIDIRECTIONAL else 1
    layer_in = lhs
    last_layer_hT = []
    for l in range(NUM_LAYERS):
        dir_outs = []
        last_layer_hT = []
        for d in range(num_dirs):
            p = params["gru"][(l, d)]
            x = layer_in if d == 0 else layer_in[:, ::-1, :]
            out, hT = gru_dir_ref(x.astype(jnp.float32), p)
            if d == 1:
                out = out[:, ::-1, :]
            dir_outs.append(out)
            last_layer_hT.append(hT)
        layer_in = jnp.concatenate(dir_outs, axis=-1)
    hidden = jnp.concatenate(last_layer_hT, axis=1) if BIDIRECTIONAL else last_layer_hT[0]
    logits = hidden @ params["lin_w"] + params["lin_b"]
    return jax.nn.softmax(logits, axis=1)


# ---------------- deterministic parameter init ----------------
def init_params(key):
    keys = iter(jax.random.split(key, 256))
    params = {}
    params["word_emb"] = jax.random.normal(next(keys), (VOCAB, D_BERT), jnp.float32) * 0.02
    params["type_emb"] = jax.random.normal(next(keys), (2, D_BERT), jnp.float32) * 0.02
    params["pos_emb"] = jax.random.normal(next(keys), (S, D_BERT), jnp.float32) * 0.02
    params["ln_g"] = jnp.ones((D_BERT,), jnp.float32)
    params["ln_b"] = jnp.zeros((D_BERT,), jnp.float32)

    num_dirs = 2 if BIDIRECTIONAL else 1
    k = 1.0 / math.sqrt(H)
    gru = {}
    for l in range(NUM_LAYERS):
        din = D_BERT if l == 0 else H * num_dirs
        for d in range(num_dirs):
            def u(shape):
                return jax.random.uniform(next(keys), shape, jnp.float32, minval=-k, maxval=k)
            b_ir, b_iz, b_in = u((1, H)), u((1, H)), u((1, H))
            b_hr, b_hz, b_hn = u((1, H)), u((1, H)), u((1, H))
            gru[(l, d)] = dict(
                wir=u((din, H)), wiz=u((din, H)), win=u((din, H)),
                whr=u((H, H)), whz=u((H, H)), whn=u((H, H)),
                br=b_ir + b_hr, bz=b_iz + b_hz, bin=b_in, bhn=b_hn,
            )
    params["gru"] = gru

    feat = H * num_dirs
    kl = 1.0 / math.sqrt(feat)
    params["lin_w"] = jax.random.uniform(next(keys), (feat, NUM_CLASS), jnp.float32,
                                         minval=-kl, maxval=kl)
    params["lin_b"] = jax.random.uniform(next(keys), (1, NUM_CLASS), jnp.float32,
                                         minval=-kl, maxval=kl)
    return params


if __name__ == "__main__":
    root = jax.random.PRNGKey(0)
    kp, ki, kt = jax.random.split(root, 3)
    params = init_params(kp)

    input_ids = jax.random.randint(ki, (B, S), 0, VOCAB, dtype=jnp.int32)
    token_type_ids = jax.random.randint(kt, (B, S), 0, 2, dtype=jnp.int32)
    attention_mask = jnp.ones((B, S), jnp.int32)

    probs = bert_rnn_forward(params, input_ids, attention_mask, token_type_ids)
    probs = jax.block_until_ready(probs)

    probs_ref = bert_rnn_forward_ref(params, input_ids, attention_mask, token_type_ids)
    probs_ref = jax.block_until_ready(probs_ref)

    assert probs.shape == (B, NUM_CLASS)
    np.testing.assert_allclose(np.asarray(probs), np.asarray(probs_ref),
                               rtol=1e-4, atol=1e-4)
    np.testing.assert_allclose(np.asarray(probs).sum(axis=1), 1.0, atol=1e-5)
    print("KERNEL_OK")
</pallas_src>

<mosaic_0001>
module attributes {stable_mosaic.version = 11 : i64} {
  func.func @bert_rnn_fused_kernel(%arg0: memref<64x32xf32, #tpu.memory_space<vmem>>, %arg1: memref<240x96xf32, #tpu.memory_space<vmem>>, %arg2: memref<2x4xf32, #tpu.memory_space<vmem>>, %arg3: memref<64x32xf32, #tpu.memory_space<vmem>>) attributes {dimension_semantics = [], scalar_prefetch = 0 : i64, scratch_operands = 1 : i64, tpu.core_type = #tpu.core_type<tc>} {
    %c0 = arith.constant 0 : index
    %c0_0 = arith.constant 0 : index
    %0 = vector.load %arg1[%c0, %c0_0] : memref<240x96xf32, #tpu.memory_space<vmem>>, vector<32x96xf32>
    %c32 = arith.constant 32 : index
    %c0_1 = arith.constant 0 : index
    %1 = vector.load %arg1[%c32, %c0_1] : memref<240x96xf32, #tpu.memory_space<vmem>>, vector<32x96xf32>
    %c64 = arith.constant 64 : index
    %c0_2 = arith.constant 0 : index
    %2 = vector.load %arg1[%c64, %c0_2] : memref<240x96xf32, #tpu.memory_space<vmem>>, vector<32x96xf32>
    %c192 = arith.constant 192 : index
    %c0_3 = arith.constant 0 : index
    %3 = vector.load %arg1[%c192, %c0_3] : memref<240x96xf32, #tpu.memory_space<vmem>>, vector<1x96xf32>
    %c193 = arith.constant 193 : index
    %c0_4 = arith.constant 0 : index
    %4 = vector.load %arg1[%c193, %c0_4] : memref<240x96xf32, #tpu.memory_space<vmem>>, vector<1x96xf32>
    %c96 = arith.constant 96 : index
    %c0_5 = arith.constant 0 : index
    %5 = vector.load %arg1[%c96, %c0_5] : memref<240x96xf32, #tpu.memory_space<vmem>>, vector<32x96xf32>
    %c128 = arith.constant 128 : index
    %c0_6 = arith.constant 0 : index
    %6 = vector.load %arg1[%c128, %c0_6] : memref<240x96xf32, #tpu.memory_space<vmem>>, vector<32x96xf32>
    %c160 = arith.constant 160 : index
    %c0_7 = arith.constant 0 : index
    %7 = vector.load %arg1[%c160, %c0_7] : memref<240x96xf32, #tpu.memory_space<vmem>>, vector<32x96xf32>
    %c194 = arith.constant 194 : index
    %c0_8 = arith.constant 0 : index
    %8 = vector.load %arg1[%c194, %c0_8] : memref<240x96xf32, #tpu.memory_space<vmem>>, vector<1x96xf32>
    %c195 = arith.constant 195 : index
    %c0_9 = arith.constant 0 : index
    %9 = vector.load %arg1[%c195, %c0_9] : memref<240x96xf32, #tpu.memory_space<vmem>>, vector<1x96xf32>
    %c0_10 = arith.constant 0 : index
    %c0_11 = arith.constant 0 : index
    %10 = vector.load %arg0[%c0_10, %c0_11] : memref<64x32xf32, #tpu.memory_space<vmem>>, vector<64x32xf32>
    %cst = arith.constant dense<0.000000e+00> : vector<64x96xf32>
    %11 = tpu.matmul %10, %0, %cst {dimension_numbers = #tpu.dot_dimension_numbers<[1], [0], [0], [1], [0, 0, 1, 1], [], []>} : vector<64x32xf32>, vector<32x96xf32>, vector<64x96xf32> -> vector<64x96xf32>
    %12 = vector.broadcast %3 : vector<1x96xf32> to vector<64x96xf32>
    %13 = arith.addf %11, %12 : vector<64x96xf32>
    %cst_12 = arith.constant dense<0.000000e+00> : vector<64x96xf32>
    %14 = tpu.matmul %10, %1, %cst_12 {dimension_numbers = #tpu.dot_dimension_numbers<[1], [0], [0], [1], [0, 0, 1, 1], [], []>} : vector<64x32xf32>, vector<32x96xf32>, vector<64x96xf32> -> vector<64x96xf32>
    %15 = vector.shape_cast %4 : vector<1x96xf32> to vector<1x96xf32>
    %16 = vector.broadcast %15 : vector<1x96xf32> to vector<8x96xf32>
    %cst_13 = arith.constant 0.000000e+00 : f32
    %17 = vector.broadcast %cst_13 : f32 to vector<8x32xf32>
    %cst_14 = arith.constant dense<0.000000e+00> : vector<8x96xf32>
    %18 = tpu.matmul %17, %2, %cst_14 {dimension_numbers = #tpu.dot_dimension_numbers<[1], [0], [0], [1], [0, 0, 1, 1], [], []>} : vector<8x32xf32>, vector<32x96xf32>, vector<8x96xf32> -> vector<8x96xf32>
    %19 = arith.addf %18, %16 : vector<8x96xf32>
    %20 = vector.extract_strided_slice %13 {offsets = [0, 0], sizes = [8, 96], strides = [1, 1]} : vector<64x96xf32> to vector<8x96xf32>
    %21 = vector.extract_strided_slice %14 {offsets = [56, 0], sizes = [8, 96], strides = [1, 1]} : vector<64x96xf32> to vector<8x96xf32>
    %22 = arith.addf %20, %21 : vector<8x96xf32>
    %23 = vector.extract_strided_slice %22 {offsets = [0, 0], sizes = [8, 64], strides = [1, 1]} : vector<8x96xf32> to vector<8x64xf32>
    %24 = vector.extract_strided_slice %19 {offsets = [0, 0], sizes = [8, 64], strides = [1, 1]} : vector<8x96xf32> to vector<8x64xf32>
    %25 = arith.addf %23, %24 : vector<8x64xf32>
    %26 = arith.negf %25 : vector<8x64xf32>
    %27 = math.exp %26 : vector<8x64xf32>
    %cst_15 = arith.constant 1.000000e+00 : f32
    %28 = vector.broadcast %cst_15 : f32 to vector<8x64xf32>
    %29 = arith.addf %28, %27 : vector<8x64xf32>
    %30 = arith.divf %28, %29 : vector<8x64xf32>
    %31 = vector.extract_strided_slice %30 {offsets = [0, 0], sizes = [8, 32], strides = [1, 1]} : vector<8x64xf32> to vector<8x32xf32>
    %32 = vector.extract_strided_slice %30 {offsets = [0, 32], sizes = [8, 32], strides = [1, 1]} : vector<8x64xf32> to vector<8x32xf32>
    %33 = vector.extract_strided_slice %22 {offsets = [0, 64], sizes = [8, 32], strides = [1, 1]} : vector<8x96xf32> to vector<8x32xf32>
    %34 = vector.extract_strided_slice %19 {offsets = [0, 64], sizes = [8, 32], strides = [1, 1]} : vector<8x96xf32> to vector<8x32xf32>
    %35 = arith.mulf %31, %34 : vector<8x32xf32>
    %36 = arith.addf %33, %35 : vector<8x32xf32>
    %37 = math.tanh %36 : vector<8x32xf32>
    %cst_16 = arith.constant 1.000000e+00 : f32
    %38 = vector.broadcast %cst_16 : f32 to vector<8x32xf32>
    %39 = arith.subf %38, %32 : vector<8x32xf32>
    %40 = arith.mulf %39, %37 : vector<8x32xf32>
    %41 = arith.mulf %32, %17 : vector<8x32xf32>
    %42 = arith.addf %40, %41 : vector<8x32xf32>
    %43 = vector.extract_strided_slice %42 {offsets = [0, 0], sizes = [8, 16], strides = [1, 1]} : vector<8x32xf32> to vector<8x16xf32>
    %c0_17 = arith.constant 0 : index
    %c0_18 = arith.constant 0 : index
    %44 = vector.load %arg3[%c0_17, %c0_18] : memref<64x32xf32, #tpu.memory_space<vmem>>, vector<8x16xf32>
    tpu.vector_store %arg3[%c0_17, %c0_18], %43 {strides = array<i32>} : memref<64x32xf32, #tpu.memory_space<vmem>>, vector<8x16xf32>,
    %45 = vector.extract_strided_slice %42 {offsets = [0, 16], sizes = [8, 16], strides = [1, 1]} : vector<8x32xf32> to vector<8x16xf32>
    %c56 = arith.constant 56 : index
    %c16 = arith.constant 16 : index
    %46 = vector.load %arg3[%c56, %c16] : memref<64x32xf32, #tpu.memory_space<vmem>>, vector<8x16xf32>
    tpu.vector_store %arg3[%c56, %c16], %45 {strides = array<i32>} : memref<64x32xf32, #tpu.memory_space<vmem>>, vector<8x16xf32>,
    %cst_19 = arith.constant dense<0.000000e+00> : vector<8x96xf32>
    %47 = tpu.matmul %42, %2, %cst_19 {dimension_numbers = #tpu.dot_dimension_numbers<[1], [0], [0], [1], [0, 0, 1, 1], [], []>} : vector<8x32xf32>, vector<32x96xf32>, vector<8x96xf32> -> vector<8x96xf32>
    %48 = arith.addf %47, %16 : vector<8x96xf32>
    %49 = vector.extract_strided_slice %13 {offsets = [8, 0], sizes = [8, 96], strides = [1, 1]} : vector<64x96xf32> to vector<8x96xf32>
    %50 = vector.extract_strided_slice %14 {offsets = [48, 0], sizes = [8, 96], strides = [1, 1]} : vector<64x96xf32> to vector<8x96xf32>
    %51 = arith.addf %49, %50 : vector<8x96xf32>
    %52 = vector.extract_strided_slice %51 {offsets = [0, 0], sizes = [8, 64], strides = [1, 1]} : vector<8x96xf32> to vector<8x64xf32>
    %53 = vector.extract_strided_slice %48 {offsets = [0, 0], sizes = [8, 64], strides = [1, 1]} : vector<8x96xf32> to vector<8x64xf32>
    %54 = arith.addf %52, %53 : vector<8x64xf32>
    %55 = arith.negf %54 : vector<8x64xf32>
    %56 = math.exp %55 : vector<8x64xf32>
    %cst_20 = arith.constant 1.000000e+00 : f32
    %57 = vector.broadcast %cst_20 : f32 to vector<8x64xf32>
    %58 = arith.addf %57, %56 : vector<8x64xf32>
    %59 = arith.divf %57, %58 : vector<8x64xf32>
    %60 = vector.extract_strided_slice %59 {offsets = [0, 0], sizes = [8, 32], strides = [1, 1]} : vector<8x64xf32> to vector<8x32xf32>
    %61 = vector.extract_strided_slice %59 {offsets = [0, 32], sizes = [8, 32], strides = [1, 1]} : vector<8x64xf32> to vector<8x32xf32>
    %62 = vector.extract_strided_slice %51 {offsets = [0, 64], sizes = [8, 32], strides = [1, 1]} : vector<8x96xf32> to vector<8x32xf32>
    %63 = vector.extract_strided_slice %48 {offsets = [0, 64], sizes = [8, 32], strides = [1, 1]} : vector<8x96xf32> to vector<8x32xf32>
    %64 = arith.mulf %60, %63 : vector<8x32xf32>
    %65 = arith.addf %62, %64 : vector<8x32xf32>
    %66 = math.tanh %65 : vector<8x32xf32>
    %cst_21 = arith.constant 1.000000e+00 : f32
    %67 = vector.broadcast %cst_21 : f32 to vector<8x32xf32>
    %68 = arith.subf %67, %61 : vector<8x32xf32>
    %69 = arith.mulf %68, %66 : vector<8x32xf32>
    %70 = arith.mulf %61, %42 : vector<8x32xf32>
    %71 = arith.addf %69, %70 : vector<8x32xf32>
    %72 = vector.extract_strided_slice %71 {offsets = [0, 0], sizes = [8, 16], strides = [1, 1]} : vector<8x32xf32> to vector<8x16xf32>
    %c8 = arith.constant 8 : index
    %c0_22 = arith.constant 0 : index
    %73 = vector.load %arg3[%c8, %c0_22] : memref<64x32xf32, #tpu.memory_space<vmem>>, vector<8x16xf32>
    tpu.vector_store %arg3[%c8, %c0_22], %72 {strides = array<i32>} : memref<64x32xf32, #tpu.memory_space<vmem>>, vector<8x16xf32>,
    %74 = vector.extract_strided_slice %71 {offsets = [0, 16], sizes = [8, 16], strides = [1, 1]} : vector<8x32xf32> to vector<8x16xf32>
    %c48 = arith.constant 48 : index
    %c16_23 = arith.constant 16 : index
    %75 = vector.load %arg3[%c48, %c16_23] : memref<64x32xf32, #tpu.memory_space<vmem>>, vector<8x16xf32>
    tpu.vector_store %arg3[%c48, %c16_23], %74 {strides = array<i32>} : memref<64x32xf32, #tpu.memory_space<vmem>>, vector<8x16xf32>,
    %cst_24 = arith.constant dense<0.000000e+00> : vector<8x96xf32>
    %76 = tpu.matmul %71, %2, %cst_24 {dimension_numbers = #tpu.dot_dimension_numbers<[1], [0], [0], [1], [0, 0, 1, 1], [], []>} : vector<8x32xf32>, vector<32x96xf32>, vector<8x96xf32> -> vector<8x96xf32>
    %77 = arith.addf %76, %16 : vector<8x96xf32>
    %78 = vector.extract_strided_slice %13 {offsets = [16, 0], sizes = [8, 96], strides = [1, 1]} : vector<64x96xf32> to vector<8x96xf32>
    %79 = vector.extract_strided_slice %14 {offsets = [40, 0], sizes = [8, 96], strides = [1, 1]} : vector<64x96xf32> to vector<8x96xf32>
    %80 = arith.addf %78, %79 : vector<8x96xf32>
    %81 = vector.extract_strided_slice %80 {offsets = [0, 0], sizes = [8, 64], strides = [1, 1]} : vector<8x96xf32> to vector<8x64xf32>
    %82 = vector.extract_strided_slice %77 {offsets = [0, 0], sizes = [8, 64], strides = [1, 1]} : vector<8x96xf32> to vector<8x64xf32>
    %83 = arith.addf %81, %82 : vector<8x64xf32>
    %84 = arith.negf %83 : vector<8x64xf32>
    %85 = math.exp %84 : vector<8x64xf32>
    %cst_25 = arith.constant 1.000000e+00 : f32
    %86 = vector.broadcast %cst_25 : f32 to vector<8x64xf32>
    %87 = arith.addf %86, %85 : vector<8x64xf32>
    %88 = arith.divf %86, %87 : vector<8x64xf32>
    %89 = vector.extract_strided_slice %88 {offsets = [0, 0], sizes = [8, 32], strides = [1, 1]} : vector<8x64xf32> to vector<8x32xf32>
    %90 = vector.extract_strided_slice %88 {offsets = [0, 32], sizes = [8, 32], strides = [1, 1]} : vector<8x64xf32> to vector<8x32xf32>
    %91 = vector.extract_strided_slice %80 {offsets = [0, 64], sizes = [8, 32], strides = [1, 1]} : vector<8x96xf32> to vector<8x32xf32>
    %92 = vector.extract_strided_slice %77 {offsets = [0, 64], sizes = [8, 32], strides = [1, 1]} : vector<8x96xf32> to vector<8x32xf32>
    %93 = arith.mulf %89, %92 : vector<8x32xf32>
    %94 = arith.addf %91, %93 : vector<8x32xf32>
    %95 = math.tanh %94 : vector<8x32xf32>
    %cst_26 = arith.constant 1.000000e+00 : f32
    %96 = vector.broadcast %cst_26 : f32 to vector<8x32xf32>
    %97 = arith.subf %96, %90 : vector<8x32xf32>
    %98 = arith.mulf %97, %95 : vector<8x32xf32>
    %99 = arith.mulf %90, %71 : vector<8x32xf32>
    %100 = arith.addf %98, %99 : vector<8x32xf32>
    %101 = vector.extract_strided_slice %100 {offsets = [0, 0], sizes = [8, 16], strides = [1, 1]} : vector<8x32xf32> to vector<8x16xf32>
    %c16_27 = arith.constant 16 : index
    %c0_28 = arith.constant 0 : index
    %102 = vector.load %arg3[%c16_27, %c0_28] : memref<64x32xf32, #tpu.memory_space<vmem>>, vector<8x16xf32>
    tpu.vector_store %arg3[%c16_27, %c0_28], %101 {strides = array<i32>} : memref<64x32xf32, #tpu.memory_space<vmem>>, vector<8x16xf32>,
    %103 = vector.extract_strided_slice %100 {offsets = [0, 16], sizes = [8, 16], strides = [1, 1]} : vector<8x32xf32> to vector<8x16xf32>
    %c40 = arith.constant 40 : index
    %c16_29 = arith.constant 16 : index
    %104 = vector.load %arg3[%c40, %c16_29] : memref<64x32xf32, #tpu.memory_space<vmem>>, vector<8x16xf32>
    tpu.vector_store %arg3[%c40, %c16_29], %103 {strides = array<i32>} : memref<64x32xf32, #tpu.memory_space<vmem>>, vector<8x16xf32>,
    %cst_30 = arith.constant dense<0.000000e+00> : vector<8x96xf32>
    %105 = tpu.matmul %100, %2, %cst_30 {dimension_numbers = #tpu.dot_dimension_numbers<[1], [0], [0], [1], [0, 0, 1, 1], [], []>} : vector<8x32xf32>, vector<32x96xf32>, vector<8x96xf32> -> vector<8x96xf32>
    %106 = arith.addf %105, %16 : vector<8x96xf32>
    %107 = vector.extract_strided_slice %13 {offsets = [24, 0], sizes = [8, 96], strides = [1, 1]} : vector<64x96xf32> to vector<8x96xf32>
    %108 = vector.extract_strided_slice %14 {offsets = [32, 0], sizes = [8, 96], strides = [1, 1]} : vector<64x96xf32> to vector<8x96xf32>
    %109 = arith.addf %107, %108 : vector<8x96xf32>
    %110 = vector.extract_strided_slice %109 {offsets = [0, 0], sizes = [8, 64], strides = [1, 1]} : vector<8x96xf32> to vector<8x64xf32>
    %111 = vector.extract_strided_slice %106 {offsets = [0, 0], sizes = [8, 64], strides = [1, 1]} : vector<8x96xf32> to vector<8x64xf32>
    %112 = arith.addf %110, %111 : vector<8x64xf32>
    %113 = arith.negf %112 : vector<8x64xf32>
    %114 = math.exp %113 : vector<8x64xf32>
    %cst_31 = arith.constant 1.000000e+00 : f32
    %115 = vector.broadcast %cst_31 : f32 to vector<8x64xf32>
    %116 = arith.addf %115, %114 : vector<8x64xf32>
    %117 = arith.divf %115, %116 : vector<8x64xf32>
    %118 = vector.extract_strided_slice %117 {offsets = [0, 0], sizes = [8, 32], strides = [1, 1]} : vector<8x64xf32> to vector<8x32xf32>
    %119 = vector.extract_strided_slice %117 {offsets = [0, 32], sizes = [8, 32], strides = [1, 1]} : vector<8x64xf32> to vector<8x32xf32>
    %120 = vector.extract_strided_slice %109 {offsets = [0, 64], sizes = [8, 32], strides = [1, 1]} : vector<8x96xf32> to vector<8x32xf32>
    %121 = vector.extract_strided_slice %106 {offsets = [0, 64], sizes = [8, 32], strides = [1, 1]} : vector<8x96xf32> to vector<8x32xf32>
    %122 = arith.mulf %118, %121 : vector<8x32xf32>
    %123 = arith.addf %120, %122 : vector<8x32xf32>
    %124 = math.tanh %123 : vector<8x32xf32>
    %cst_32 = arith.constant 1.000000e+00 : f32
    %125 = vector.broadcast %cst_32 : f32 to vector<8x32xf32>
    %126 = arith.subf %125, %119 : vector<8x32xf32>
    %127 = arith.mulf %126, %124 : vector<8x32xf32>
    %128 = arith.mulf %119, %100 : vector<8x32xf32>
    %129 = arith.addf %127, %128 : vector<8x32xf32>
    %130 = vector.extract_strided_slice %129 {offsets = [0, 0], sizes = [8, 16], strides = [1, 1]} : vector<8x32xf32> to vector<8x16xf32>
    %c24 = arith.constant 24 : index
    %c0_33 = arith.constant 0 : index
    %131 = vector.load %arg3[%c24, %c0_33] : memref<64x32xf32, #tpu.memory_space<vmem>>, vector<8x16xf32>
    tpu.vector_store %arg3[%c24, %c0_33], %130 {strides = array<i32>} : memref<64x32xf32, #tpu.memory_space<vmem>>, vector<8x16xf32>,
    %132 = vector.extract_strided_slice %129 {offsets = [0, 16], sizes = [8, 16], strides = [1, 1]} : vector<8x32xf32> to vector<8x16xf32>
    %c32_34 = arith.constant 32 : index
    %c16_35 = arith.constant 16 : index
    %133 = vector.load %arg3[%c32_34, %c16_35] : memref<64x32xf32, #tpu.memory_space<vmem>>, vector<8x16xf32>
    tpu.vector_store %arg3[%c32_34, %c16_35], %132 {strides = array<i32>} : memref<64x32xf32, #tpu.memory_space<vmem>>, vector<8x16xf32>,
    %cst_36 = arith.constant dense<0.000000e+00> : vector<8x96xf32>
    %134 = tpu.matmul %129, %2, %cst_36 {dimension_numbers = #tpu.dot_dimension_numbers<[1], [0], [0], [1], [0, 0, 1, 1], [], []>} : vector<8x32xf32>, vector<32x96xf32>, vector<8x96xf32> -> vector<8x96xf32>
    %135 = arith.addf %134, %16 : vector<8x96xf32>
    %136 = vector.extract_strided_slice %13 {offsets = [32, 0], sizes = [8, 96], strides = [1, 1]} : vector<64x96xf32> to vector<8x96xf32>
    %137 = vector.extract_strided_slice %14 {offsets = [24, 0], sizes = [8, 96], strides = [1, 1]} : vector<64x96xf32> to vector<8x96xf32>
    %138 = arith.addf %136, %137 : vector<8x96xf32>
    %139 = vector.extract_strided_slice %138 {offsets = [0, 0], sizes = [8, 64], strides = [1, 1]} : vector<8x96xf32> to vector<8x64xf32>
    %140 = vector.extract_strided_slice %135 {offsets = [0, 0], sizes = [8, 64], strides = [1, 1]} : vector<8x96xf32> to vector<8x64xf32>
    %141 = arith.addf %139, %140 : vector<8x64xf32>
    %142 = arith.negf %141 : vector<8x64xf32>
    %143 = math.exp %142 : vector<8x64xf32>
    %cst_37 = arith.constant 1.000000e+00 : f32
    %144 = vector.broadcast %cst_37 : f32 to vector<8x64xf32>
    %145 = arith.addf %144, %143 : vector<8x64xf32>
    %146 = arith.divf %144, %145 : vector<8x64xf32>
    %147 = vector.extract_strided_slice %146 {offsets = [0, 0], sizes = [8, 32], strides = [1, 1]} : vector<8x64xf32> to vector<8x32xf32>
    %148 = vector.extract_strided_slice %146 {offsets = [0, 32], sizes = [8, 32], strides = [1, 1]} : vector<8x64xf32> to vector<8x32xf32>
    %149 = vector.extract_strided_slice %138 {offsets = [0, 64], sizes = [8, 32], strides = [1, 1]} : vector<8x96xf32> to vector<8x32xf32>
    %150 = vector.extract_strided_slice %135 {offsets = [0, 64], sizes = [8, 32], strides = [1, 1]} : vector<8x96xf32> to vector<8x32xf32>
    %151 = arith.mulf %147, %150 : vector<8x32xf32>
    %152 = arith.addf %149, %151 : vector<8x32xf32>
    %153 = math.tanh %152 : vector<8x32xf32>
    %cst_38 = arith.constant 1.000000e+00 : f32
    %154 = vector.broadcast %cst_38 : f32 to vector<8x32xf32>
    %155 = arith.subf %154, %148 : vector<8x32xf32>
    %156 = arith.mulf %155, %153 : vector<8x32xf32>
    %157 = arith.mulf %148, %129 : vector<8x32xf32>
    %158 = arith.addf %156, %157 : vector<8x32xf32>
    %159 = vector.extract_strided_slice %158 {offsets = [0, 0], sizes = [8, 16], strides = [1, 1]} : vector<8x32xf32> to vector<8x16xf32>
    %c32_39 = arith.constant 32 : index
    %c0_40 = arith.constant 0 : index
    %160 = vector.load %arg3[%c32_39, %c0_40] : memref<64x32xf32, #tpu.memory_space<vmem>>, vector<8x16xf32>
    tpu.vector_store %arg3[%c32_39, %c0_40], %159 {strides = array<i32>} : memref<64x32xf32, #tpu.memory_space<vmem>>, vector<8x16xf32>,
    %161 = vector.extract_strided_slice %158 {offsets = [0, 16], sizes = [8, 16], strides = [1, 1]} : vector<8x32xf32> to vector<8x16xf32>
    %c24_41 = arith.constant 24 : index
    %c16_42 = arith.constant 16 : index
    %162 = vector.load %arg3[%c24_41, %c16_42] : memref<64x32xf32, #tpu.memory_space<vmem>>, vector<8x16xf32>
    tpu.vector_store %arg3[%c24_41, %c16_42], %161 {strides = array<i32>} : memref<64x32xf32, #tpu.memory_space<vmem>>, vector<8x16xf32>,
    %cst_43 = arith.constant dense<0.000000e+00> : vector<8x96xf32>
    %163 = tpu.matmul %158, %2, %cst_43 {dimension_numbers = #tpu.dot_dimension_numbers<[1], [0], [0], [1], [0, 0, 1, 1], [], []>} : vector<8x32xf32>, vector<32x96xf32>, vector<8x96xf32> -> vector<8x96xf32>
    %164 = arith.addf %163, %16 : vector<8x96xf32>
    %165 = vector.extract_strided_slice %13 {offsets = [40, 0], sizes = [8, 96], strides = [1, 1]} : vector<64x96xf32> to vector<8x96xf32>
    %166 = vector.extract_strided_slice %14 {offsets = [16, 0], sizes = [8, 96], strides = [1, 1]} : vector<64x96xf32> to vector<8x96xf32>
    %167 = arith.addf %165, %166 : vector<8x96xf32>
    %168 = vector.extract_strided_slice %167 {offsets = [0, 0], sizes = [8, 64], strides = [1, 1]} : vector<8x96xf32> to vector<8x64xf32>
    %169 = vector.extract_strided_slice %164 {offsets = [0, 0], sizes = [8, 64], strides = [1, 1]} : vector<8x96xf32> to vector<8x64xf32>
    %170 = arith.addf %168, %169 : vector<8x64xf32>
    %171 = arith.negf %170 : vector<8x64xf32>
    %172 = math.exp %171 : vector<8x64xf32>
    %cst_44 = arith.constant 1.000000e+00 : f32
    %173 = vector.broadcast %cst_44 : f32 to vector<8x64xf32>
    %174 = arith.addf %173, %172 : vector<8x64xf32>
    %175 = arith.divf %173, %174 : vector<8x64xf32>
    %176 = vector.extract_strided_slice %175 {offsets = [0, 0], sizes = [8, 32], strides = [1, 1]} : vector<8x64xf32> to vector<8x32xf32>
    %177 = vector.extract_strided_slice %175 {offsets = [0, 32], sizes = [8, 32], strides = [1, 1]} : vector<8x64xf32> to vector<8x32xf32>
    %178 = vector.extract_strided_slice %167 {offsets = [0, 64], sizes = [8, 32], strides = [1, 1]} : vector<8x96xf32> to vector<8x32xf32>
    %179 = vector.extract_strided_slice %164 {offsets = [0, 64], sizes = [8, 32], strides = [1, 1]} : vector<8x96xf32> to vector<8x32xf32>
    %180 = arith.mulf %176, %179 : vector<8x32xf32>
    %181 = arith.addf %178, %180 : vector<8x32xf32>
    %182 = math.tanh %181 : vector<8x32xf32>
    %cst_45 = arith.constant 1.000000e+00 : f32
    %183 = vector.broadcast %cst_45 : f32 to vector<8x32xf32>
    %184 = arith.subf %183, %177 : vector<8x32xf32>
    %185 = arith.mulf %184, %182 : vector<8x32xf32>
    %186 = arith.mulf %177, %158 : vector<8x32xf32>
    %187 = arith.addf %185, %186 : vector<8x32xf32>
    %188 = vector.extract_strided_slice %187 {offsets = [0, 0], sizes = [8, 16], strides = [1, 1]} : vector<8x32xf32> to vector<8x16xf32>
    %c40_46 = arith.constant 40 : index
    %c0_47 = arith.constant 0 : index
    %189 = vector.load %arg3[%c40_46, %c0_47] : memref<64x32xf32, #tpu.memory_space<vmem>>, vector<8x16xf32>
    tpu.vector_store %arg3[%c40_46, %c0_47], %188 {strides = array<i32>} : memref<64x32xf32, #tpu.memory_space<vmem>>, vector<8x16xf32>,
    %190 = vector.extract_strided_slice %187 {offsets = [0, 16], sizes = [8, 16], strides = [1, 1]} : vector<8x32xf32> to vector<8x16xf32>
    %c16_48 = arith.constant 16 : index
    %c16_49 = arith.constant 16 : index
    %191 = vector.load %arg3[%c16_48, %c16_49] : memref<64x32xf32, #tpu.memory_space<vmem>>, vector<8x16xf32>
    tpu.vector_store %arg3[%c16_48, %c16_49], %190 {strides = array<i32>} : memref<64x32xf32, #tpu.memory_space<vmem>>, vector<8x16xf32>,
    %cst_50 = arith.constant dense<0.000000e+00> : vector<8x96xf32>
    %192 = tpu.matmul %187, %2, %cst_50 {dimension_numbers = #tpu.dot_dimension_numbers<[1], [0], [0], [1], [0, 0, 1, 1], [], []>} : vector<8x32xf32>, vector<32x96xf32>, vector<8x96xf32> -> vector<8x96xf32>
    %193 = arith.addf %192, %16 : vector<8x96xf32>
    %194 = vector.extract_strided_slice %13 {offsets = [48, 0], sizes = [8, 96], strides = [1, 1]} : vector<64x96xf32> to vector<8x96xf32>
    %195 = vector.extract_strided_slice %14 {offsets = [8, 0], sizes = [8, 96], strides = [1, 1]} : vector<64x96xf32> to vector<8x96xf32>
    %196 = arith.addf %194, %195 : vector<8x96xf32>
    %197 = vector.extract_strided_slice %196 {offsets = [0, 0], sizes = [8, 64], strides = [1, 1]} : vector<8x96xf32> to vector<8x64xf32>
    %198 = vector.extract_strided_slice %193 {offsets = [0, 0], sizes = [8, 64], strides = [1, 1]} : vector<8x96xf32> to vector<8x64xf32>
    %199 = arith.addf %197, %198 : vector<8x64xf32>
    %200 = arith.negf %199 : vector<8x64xf32>
    %201 = math.exp %200 : vector<8x64xf32>
    %cst_51 = arith.constant 1.000000e+00 : f32
    %202 = vector.broadcast %cst_51 : f32 to vector<8x64xf32>
    %203 = arith.addf %202, %201 : vector<8x64xf32>
    %204 = arith.divf %202, %203 : vector<8x64xf32>
    %205 = vector.extract_strided_slice %204 {offsets = [0, 0], sizes = [8, 32], strides = [1, 1]} : vector<8x64xf32> to vector<8x32xf32>
    %206 = vector.extract_strided_slice %204 {offsets = [0, 32], sizes = [8, 32], strides = [1, 1]} : vector<8x64xf32> to vector<8x32xf32>
    %207 = vector.extract_strided_slice %196 {offsets = [0, 64], sizes = [8, 32], strides = [1, 1]} : vector<8x96xf32> to vector<8x32xf32>
    %208 = vector.extract_strided_slice %193 {offsets = [0, 64], sizes = [8, 32], strides = [1, 1]} : vector<8x96xf32> to vector<8x32xf32>
    %209 = arith.mulf %205, %208 : vector<8x32xf32>
    %210 = arith.addf %207, %209 : vector<8x32xf32>
    %211 = math.tanh %210 : vector<8x32xf32>
    %cst_52 = arith.constant 1.000000e+00 : f32
    %212 = vector.broadcast %cst_52 : f32 to vector<8x32xf32>
    %213 = arith.subf %212, %206 : vector<8x32xf32>
    %214 = arith.mulf %213, %211 : vector<8x32xf32>
    %215 = arith.mulf %206, %187 : vector<8x32xf32>
    %216 = arith.addf %214, %215 : vector<8x32xf32>
    %217 = vector.extract_strided_slice %216 {offsets = [0, 0], sizes = [8, 16], strides = [1, 1]} : vector<8x32xf32> to vector<8x16xf32>
    %c48_53 = arith.constant 48 : index
    %c0_54 = arith.constant 0 : index
    %218 = vector.load %arg3[%c48_53, %c0_54] : memref<64x32xf32, #tpu.memory_space<vmem>>, vector<8x16xf32>
    tpu.vector_store %arg3[%c48_53, %c0_54], %217 {strides = array<i32>} : memref<64x32xf32, #tpu.memory_space<vmem>>, vector<8x16xf32>,
    %219 = vector.extract_strided_slice %216 {offsets = [0, 16], sizes = [8, 16], strides = [1, 1]} : vector<8x32xf32> to vector<8x16xf32>
    %c8_55 = arith.constant 8 : index
    %c16_56 = arith.constant 16 : index
    %220 = vector.load %arg3[%c8_55, %c16_56] : memref<64x32xf32, #tpu.memory_space<vmem>>, vector<8x16xf32>
    tpu.vector_store %arg3[%c8_55, %c16_56], %219 {strides = array<i32>} : memref<64x32xf32, #tpu.memory_space<vmem>>, vector<8x16xf32>,
    %cst_57 = arith.constant dense<0.000000e+00> : vector<8x96xf32>
    %221 = tpu.matmul %216, %2, %cst_57 {dimension_numbers = #tpu.dot_dimension_numbers<[1], [0], [0], [1], [0, 0, 1, 1], [], []>} : vector<8x32xf32>, vector<32x96xf32>, vector<8x96xf32> -> vector<8x96xf32>
    %222 = arith.addf %221, %16 : vector<8x96xf32>
    %223 = vector.extract_strided_slice %13 {offsets = [56, 0], sizes = [8, 96], strides = [1, 1]} : vector<64x96xf32> to vector<8x96xf32>
    %224 = vector.extract_strided_slice %14 {offsets = [0, 0], sizes = [8, 96], strides = [1, 1]} : vector<64x96xf32> to vector<8x96xf32>
    %225 = arith.addf %223, %224 : vector<8x96xf32>
    %226 = vector.extract_strided_slice %225 {offsets = [0, 0], sizes = [8, 64], strides = [1, 1]} : vector<8x96xf32> to vector<8x64xf32>
    %227 = vector.extract_strided_slice %222 {offsets = [0, 0], sizes = [8, 64], strides = [1, 1]} : vector<8x96xf32> to vector<8x64xf32>
    %228 = arith.addf %226, %227 : vector<8x64xf32>
    %229 = arith.negf %228 : vector<8x64xf32>
    %230 = math.exp %229 : vector<8x64xf32>
    %cst_58 = arith.constant 1.000000e+00 : f32
    %231 = vector.broadcast %cst_58 : f32 to vector<8x64xf32>
    %232 = arith.addf %231, %230 : vector<8x64xf32>
    %233 = arith.divf %231, %232 : vector<8x64xf32>
    %234 = vector.extract_strided_slice %233 {offsets = [0, 0], sizes = [8, 32], strides = [1, 1]} : vector<8x64xf32> to vector<8x32xf32>
    %235 = vector.extract_strided_slice %233 {offsets = [0, 32], sizes = [8, 32], strides = [1, 1]} : vector<8x64xf32> to vector<8x32xf32>
    %236 = vector.extract_strided_slice %225 {offsets = [0, 64], sizes = [8, 32], strides = [1, 1]} : vector<8x96xf32> to vector<8x32xf32>
    %237 = vector.extract_strided_slice %222 {offsets = [0, 64], sizes = [8, 32], strides = [1, 1]} : vector<8x96xf32> to vector<8x32xf32>
    %238 = arith.mulf %234, %237 : vector<8x32xf32>
    %239 = arith.addf %236, %238 : vector<8x32xf32>
    %240 = math.tanh %239 : vector<8x32xf32>
    %cst_59 = arith.constant 1.000000e+00 : f32
    %241 = vector.broadcast %cst_59 : f32 to vector<8x32xf32>
    %242 = arith.subf %241, %235 : vector<8x32xf32>
    %243 = arith.mulf %242, %240 : vector<8x32xf32>
    %244 = arith.mulf %235, %216 : vector<8x32xf32>
    %245 = arith.addf %243, %244 : vector<8x32xf32>
    %246 = vector.extract_strided_slice %245 {offsets = [0, 0], sizes = [8, 16], strides = [1, 1]} : vector<8x32xf32> to vector<8x16xf32>
    %c56_60 = arith.constant 56 : index
    %c0_61 = arith.constant 0 : index
    %247 = vector.load %arg3[%c56_60, %c0_61] : memref<64x32xf32, #tpu.memory_space<vmem>>, vector<8x16xf32>
    tpu.vector_store %arg3[%c56_60, %c0_61], %246 {strides = array<i32>} : memref<64x32xf32, #tpu.memory_space<vmem>>, vector<8x16xf32>,
    %248 = vector.extract_strided_slice %245 {offsets = [0, 16], sizes = [8, 16], strides = [1, 1]} : vector<8x32xf32> to vector<8x16xf32>
    %c0_62 = arith.constant 0 : index
    %c16_63 = arith.constant 16 : index
    %249 = vector.load %arg3[%c0_62, %c16_63] : memref<64x32xf32, #tpu.memory_space<vmem>>, vector<8x16xf32>
    tpu.vector_store %arg3[%c0_62, %c16_63], %248 {strides = array<i32>} : memref<64x32xf32, #tpu.memory_space<vmem>>, vector<8x16xf32>,
    %c0_64 = arith.constant 0 : index
    %c0_65 = arith.constant 0 : index
    %250 = vector.load %arg3[%c0_64, %c0_65] : memref<64x32xf32, #tpu.memory_space<vmem>>, vector<64x32xf32>
    %cst_66 = arith.constant dense<0.000000e+00> : vector<64x96xf32>
    %251 = tpu.matmul %250, %5, %cst_66 {dimension_numbers = #tpu.dot_dimension_numbers<[1], [0], [0], [1], [0, 0, 1, 1], [], []>} : vector<64x32xf32>, vector<32x96xf32>, vector<64x96xf32> -> vector<64x96xf32>
    %252 = vector.broadcast %8 : vector<1x96xf32> to vector<64x96xf32>
    %253 = arith.addf %251, %252 : vector<64x96xf32>
    %cst_67 = arith.constant dense<0.000000e+00> : vector<64x96xf32>
    %254 = tpu.matmul %250, %6, %cst_67 {dimension_numbers = #tpu.dot_dimension_numbers<[1], [0], [0], [1], [0, 0, 1, 1], [], []>} : vector<64x32xf32>, vector<32x96xf32>, vector<64x96xf32> -> vector<64x96xf32>
    %255 = vector.shape_cast %9 : vector<1x96xf32> to vector<1x96xf32>
    %256 = vector.broadcast %255 : vector<1x96xf32> to vector<8x96xf32>
    %cst_68 = arith.constant 0.000000e+00 : f32
    %257 = vector.broadcast %cst_68 : f32 to vector<8x32xf32>
    %cst_69 = arith.constant dense<0.000000e+00> : vector<8x96xf32>
    %258 = tpu.matmul %257, %7, %cst_69 {dimension_numbers = #tpu.dot_dimension_numbers<[1], [0], [0], [1], [0, 0, 1, 1], [], []>} : vector<8x32xf32>, vector<32x96xf32>, vector<8x96xf32> -> vector<8x96xf32>
    %259 = arith.addf %258, %256 : vector<8x96xf32>
    %260 = vector.extract_strided_slice %253 {offsets = [0, 0], sizes = [8, 96], strides = [1, 1]} : vector<64x96xf32> to vector<8x96xf32>
    %261 = vector.extract_strided_slice %254 {offsets = [56, 0], sizes = [8, 96], strides = [1, 1]} : vector<64x96xf32> to vector<8x96xf32>
    %262 = arith.addf %260, %261 : vector<8x96xf32>
    %263 = vector.extract_strided_slice %262 {offsets = [0, 0], sizes = [8, 64], strides = [1, 1]} : vector<8x96xf32> to vector<8x64xf32>
    %264 = vector.extract_strided_slice %259 {offsets = [0, 0], sizes = [8, 64], strides = [1, 1]} : vector<8x96xf32> to vector<8x64xf32>
    %265 = arith.addf %263, %264 : vector<8x64xf32>
    %266 = arith.negf %265 : vector<8x64xf32>
    %267 = math.exp %266 : vector<8x64xf32>
    %cst_70 = arith.constant 1.000000e+00 : f32
    %268 = vector.broadcast %cst_70 : f32 to vector<8x64xf32>
    %269 = arith.addf %268, %267 : vector<8x64xf32>
    %270 = arith.divf %268, %269 : vector<8x64xf32>
    %271 = vector.extract_strided_slice %270 {offsets = [0, 0], sizes = [8, 32], strides = [1, 1]} : vector<8x64xf32> to vector<8x32xf32>
    %272 = vector.extract_strided_slice %270 {offsets = [0, 32], sizes = [8, 32], strides = [1, 1]} : vector<8x64xf32> to vector<8x32xf32>
    %273 = vector.extract_strided_slice %262 {offsets = [0, 64], sizes = [8, 32], strides = [1, 1]} : vector<8x96xf32> to vector<8x32xf32>
    %274 = vector.extract_strided_slice %259 {offsets = [0, 64], sizes = [8, 32], strides = [1, 1]} : vector<8x96xf32> to vector<8x32xf32>
    %275 = arith.mulf %271, %274 : vector<8x32xf32>
    %276 = arith.addf %273, %275 : vector<8x32xf32>
    %277 = math.tanh %276 : vector<8x32xf32>
    %cst_71 = arith.constant 1.000000e+00 : f32
    %278 = vector.broadcast %cst_71 : f32 to vector<8x32xf32>
    %279 = arith.subf %278, %272 : vector<8x32xf32>
    %280 = arith.mulf %279, %277 : vector<8x32xf32>
    %281 = arith.mulf %272, %257 : vector<8x32xf32>
    %282 = arith.addf %280, %281 : vector<8x32xf32>
    %cst_72 = arith.constant dense<0.000000e+00> : vector<8x96xf32>
    %283 = tpu.matmul %282, %7, %cst_72 {dimension_numbers = #tpu.dot_dimension_numbers<[1], [0], [0], [1], [0, 0, 1, 1], [], []>} : vector<8x32xf32>, vector<32x96xf32>, vector<8x96xf32> -> vector<8x96xf32>
    %284 = arith.addf %283, %256 : vector<8x96xf32>
    %285 = vector.extract_strided_slice %253 {offsets = [8, 0], sizes = [8, 96], strides = [1, 1]} : vector<64x96xf32> to vector<8x96xf32>
    %286 = vector.extract_strided_slice %254 {offsets = [48, 0], sizes = [8, 96], strides = [1, 1]} : vector<64x96xf32> to vector<8x96xf32>
    %287 = arith.addf %285, %286 : vector<8x96xf32>
    %288 = vector.extract_strided_slice %287 {offsets = [0, 0], sizes = [8, 64], strides = [1, 1]} : vector<8x96xf32> to vector<8x64xf32>
    %289 = vector.extract_strided_slice %284 {offsets = [0, 0], sizes = [8, 64], strides = [1, 1]} : vector<8x96xf32> to vector<8x64xf32>
    %290 = arith.addf %288, %289 : vector<8x64xf32>
    %291 = arith.negf %290 : vector<8x64xf32>
    %292 = math.exp %291 : vector<8x64xf32>
    %cst_73 = arith.constant 1.000000e+00 : f32
    %293 = vector.broadcast %cst_73 : f32 to vector<8x64xf32>
    %294 = arith.addf %293, %292 : vector<8x64xf32>
    %295 = arith.divf %293, %294 : vector<8x64xf32>
    %296 = vector.extract_strided_slice %295 {offsets = [0, 0], sizes = [8, 32], strides = [1, 1]} : vector<8x64xf32> to vector<8x32xf32>
    %297 = vector.extract_strided_slice %295 {offsets = [0, 32], sizes = [8, 32], strides = [1, 1]} : vector<8x64xf32> to vector<8x32xf32>
    %298 = vector.extract_strided_slice %287 {offsets = [0, 64], sizes = [8, 32], strides = [1, 1]} : vector<8x96xf32> to vector<8x32xf32>
    %299 = vector.extract_strided_slice %284 {offsets = [0, 64], sizes = [8, 32], strides = [1, 1]} : vector<8x96xf32> to vector<8x32xf32>
    %300 = arith.mulf %296, %299 : vector<8x32xf32>
    %301 = arith.addf %298, %300 : vector<8x32xf32>
    %302 = math.tanh %301 : vector<8x32xf32>
    %cst_74 = arith.constant 1.000000e+00 : f32
    %303 = vector.broadcast %cst_74 : f32 to vector<8x32xf32>
    %304 = arith.subf %303, %297 : vector<8x32xf32>
    %305 = arith.mulf %304, %302 : vector<8x32xf32>
    %306 = arith.mulf %297, %282 : vector<8x32xf32>
    %307 = arith.addf %305, %306 : vector<8x32xf32>
    %cst_75 = arith.constant dense<0.000000e+00> : vector<8x96xf32>
    %308 = tpu.matmul %307, %7, %cst_75 {dimension_numbers = #tpu.dot_dimension_numbers<[1], [0], [0], [1], [0, 0, 1, 1], [], []>} : vector<8x32xf32>, vector<32x96xf32>, vector<8x96xf32> -> vector<8x96xf32>
    %309 = arith.addf %308, %256 : vector<8x96xf32>
    %310 = vector.extract_strided_slice %253 {offsets = [16, 0], sizes = [8, 96], strides = [1, 1]} : vector<64x96xf32> to vector<8x96xf32>
    %311 = vector.extract_strided_slice %254 {offsets = [40, 0], sizes = [8, 96], strides = [1, 1]} : vector<64x96xf32> to vector<8x96xf32>
    %312 = arith.addf %310, %311 : vector<8x96xf32>
    %313 = vector.extract_strided_slice %312 {offsets = [0, 0], sizes = [8, 64], strides = [1, 1]} : vector<8x96xf32> to vector<8x64xf32>
    %314 = vector.extract_strided_slice %309 {offsets = [0, 0], sizes = [8, 64], strides = [1, 1]} : vector<8x96xf32> to vector<8x64xf32>
    %315 = arith.addf %313, %314 : vector<8x64xf32>
    %316 = arith.negf %315 : vector<8x64xf32>
    %317 = math.exp %316 : vector<8x64xf32>
    %cst_76 = arith.constant 1.000000e+00 : f32
    %318 = vector.broadcast %cst_76 : f32 to vector<8x64xf32>
    %319 = arith.addf %318, %317 : vector<8x64xf32>
    %320 = arith.divf %318, %319 : vector<8x64xf32>
    %321 = vector.extract_strided_slice %320 {offsets = [0, 0], sizes = [8, 32], strides = [1, 1]} : vector<8x64xf32> to vector<8x32xf32>
    %322 = vector.extract_strided_slice %320 {offsets = [0, 32], sizes = [8, 32], strides = [1, 1]} : vector<8x64xf32> to vector<8x32xf32>
    %323 = vector.extract_strided_slice %312 {offsets = [0, 64], sizes = [8, 32], strides = [1, 1]} : vector<8x96xf32> to vector<8x32xf32>
    %324 = vector.extract_strided_slice %309 {offsets = [0, 64], sizes = [8, 32], strides = [1, 1]} : vector<8x96xf32> to vector<8x32xf32>
    %325 = arith.mulf %321, %324 : vector<8x32xf32>
    %326 = arith.addf %323, %325 : vector<8x32xf32>
    %327 = math.tanh %326 : vector<8x32xf32>
    %cst_77 = arith.constant 1.000000e+00 : f32
    %328 = vector.broadcast %cst_77 : f32 to vector<8x32xf32>
    %329 = arith.subf %328, %322 : vector<8x32xf32>
    %330 = arith.mulf %329, %327 : vector<8x32xf32>
    %331 = arith.mulf %322, %307 : vector<8x32xf32>
    %332 = arith.addf %330, %331 : vector<8x32xf32>
    %cst_78 = arith.constant dense<0.000000e+00> : vector<8x96xf32>
    %333 = tpu.matmul %332, %7, %cst_78 {dimension_numbers = #tpu.dot_dimension_numbers<[1], [0], [0], [1], [0, 0, 1, 1], [], []>} : vector<8x32xf32>, vector<32x96xf32>, vector<8x96xf32> -> vector<8x96xf32>
    %334 = arith.addf %333, %256 : vector<8x96xf32>
    %335 = vector.extract_strided_slice %253 {offsets = [24, 0], sizes = [8, 96], strides = [1, 1]} : vector<64x96xf32> to vector<8x96xf32>
    %336 = vector.extract_strided_slice %254 {offsets = [32, 0], sizes = [8, 96], strides = [1, 1]} : vector<64x96xf32> to vector<8x96xf32>
    %337 = arith.addf %335, %336 : vector<8x96xf32>
    %338 = vector.extract_strided_slice %337 {offsets = [0, 0], sizes = [8, 64], strides = [1, 1]} : vector<8x96xf32> to vector<8x64xf32>
    %339 = vector.extract_strided_slice %334 {offsets = [0, 0], sizes = [8, 64], strides = [1, 1]} : vector<8x96xf32> to vector<8x64xf32>
    %340 = arith.addf %338, %339 : vector<8x64xf32>
    %341 = arith.negf %340 : vector<8x64xf32>
    %342 = math.exp %341 : vector<8x64xf32>
    %cst_79 = arith.constant 1.000000e+00 : f32
    %343 = vector.broadcast %cst_79 : f32 to vector<8x64xf32>
    %344 = arith.addf %343, %342 : vector<8x64xf32>
    %345 = arith.divf %343, %344 : vector<8x64xf32>
    %346 = vector.extract_strided_slice %345 {offsets = [0, 0], sizes = [8, 32], strides = [1, 1]} : vector<8x64xf32> to vector<8x32xf32>
    %347 = vector.extract_strided_slice %345 {offsets = [0, 32], sizes = [8, 32], strides = [1, 1]} : vector<8x64xf32> to vector<8x32xf32>
    %348 = vector.extract_strided_slice %337 {offsets = [0, 64], sizes = [8, 32], strides = [1, 1]} : vector<8x96xf32> to vector<8x32xf32>
    %349 = vector.extract_strided_slice %334 {offsets = [0, 64], sizes = [8, 32], strides = [1, 1]} : vector<8x96xf32> to vector<8x32xf32>
    %350 = arith.mulf %346, %349 : vector<8x32xf32>
    %351 = arith.addf %348, %350 : vector<8x32xf32>
    %352 = math.tanh %351 : vector<8x32xf32>
    %cst_80 = arith.constant 1.000000e+00 : f32
    %353 = vector.broadcast %cst_80 : f32 to vector<8x32xf32>
    %354 = arith.subf %353, %347 : vector<8x32xf32>
    %355 = arith.mulf %354, %352 : vector<8x32xf32>
    %356 = arith.mulf %347, %332 : vector<8x32xf32>
    %357 = arith.addf %355, %356 : vector<8x32xf32>
    %cst_81 = arith.constant dense<0.000000e+00> : vector<8x96xf32>
    %358 = tpu.matmul %357, %7, %cst_81 {dimension_numbers = #tpu.dot_dimension_numbers<[1], [0], [0], [1], [0, 0, 1, 1], [], []>} : vector<8x32xf32>, vector<32x96xf32>, vector<8x96xf32> -> vector<8x96xf32>
    %359 = arith.addf %358, %256 : vector<8x96xf32>
    %360 = vector.extract_strided_slice %253 {offsets = [32, 0], sizes = [8, 96], strides = [1, 1]} : vector<64x96xf32> to vector<8x96xf32>
    %361 = vector.extract_strided_slice %254 {offsets = [24, 0], sizes = [8, 96], strides = [1, 1]} : vector<64x96xf32> to vector<8x96xf32>
    %362 = arith.addf %360, %361 : vector<8x96xf32>
    %363 = vector.extract_strided_slice %362 {offsets = [0, 0], sizes = [8, 64], strides = [1, 1]} : vector<8x96xf32> to vector<8x64xf32>
    %364 = vector.extract_strided_slice %359 {offsets = [0, 0], sizes = [8, 64], strides = [1, 1]} : vector<8x96xf32> to vector<8x64xf32>
    %365 = arith.addf %363, %364 : vector<8x64xf32>
    %366 = arith.negf %365 : vector<8x64xf32>
    %367 = math.exp %366 : vector<8x64xf32>
    %cst_82 = arith.constant 1.000000e+00 : f32
    %368 = vector.broadcast %cst_82 : f32 to vector<8x64xf32>
    %369 = arith.addf %368, %367 : vector<8x64xf32>
    %370 = arith.divf %368, %369 : vector<8x64xf32>
    %371 = vector.extract_strided_slice %370 {offsets = [0, 0], sizes = [8, 32], strides = [1, 1]} : vector<8x64xf32> to vector<8x32xf32>
    %372 = vector.extract_strided_slice %370 {offsets = [0, 32], sizes = [8, 32], strides = [1, 1]} : vector<8x64xf32> to vector<8x32xf32>
    %373 = vector.extract_strided_slice %362 {offsets = [0, 64], sizes = [8, 32], strides = [1, 1]} : vector<8x96xf32> to vector<8x32xf32>
    %374 = vector.extract_strided_slice %359 {offsets = [0, 64], sizes = [8, 32], strides = [1, 1]} : vector<8x96xf32> to vector<8x32xf32>
    %375 = arith.mulf %371, %374 : vector<8x32xf32>
    %376 = arith.addf %373, %375 : vector<8x32xf32>
    %377 = math.tanh %376 : vector<8x32xf32>
    %cst_83 = arith.constant 1.000000e+00 : f32
    %378 = vector.broadcast %cst_83 : f32 to vector<8x32xf32>
    %379 = arith.subf %378, %372 : vector<8x32xf32>
    %380 = arith.mulf %379, %377 : vector<8x32xf32>
    %381 = arith.mulf %372, %357 : vector<8x32xf32>
    %382 = arith.addf %380, %381 : vector<8x32xf32>
    %cst_84 = arith.constant dense<0.000000e+00> : vector<8x96xf32>
    %383 = tpu.matmul %382, %7, %cst_84 {dimension_numbers = #tpu.dot_dimension_numbers<[1], [0], [0], [1], [0, 0, 1, 1], [], []>} : vector<8x32xf32>, vector<32x96xf32>, vector<8x96xf32> -> vector<8x96xf32>
    %384 = arith.addf %383, %256 : vector<8x96xf32>
    %385 = vector.extract_strided_slice %253 {offsets = [40, 0], sizes = [8, 96], strides = [1, 1]} : vector<64x96xf32> to vector<8x96xf32>
    %386 = vector.extract_strided_slice %254 {offsets = [16, 0], sizes = [8, 96], strides = [1, 1]} : vector<64x96xf32> to vector<8x96xf32>
    %387 = arith.addf %385, %386 : vector<8x96xf32>
    %388 = vector.extract_strided_slice %387 {offsets = [0, 0], sizes = [8, 64], strides = [1, 1]} : vector<8x96xf32> to vector<8x64xf32>
    %389 = vector.extract_strided_slice %384 {offsets = [0, 0], sizes = [8, 64], strides = [1, 1]} : vector<8x96xf32> to vector<8x64xf32>
    %390 = arith.addf %388, %389 : vector<8x64xf32>
    %391 = arith.negf %390 : vector<8x64xf32>
    %392 = math.exp %391 : vector<8x64xf32>
    %cst_85 = arith.constant 1.000000e+00 : f32
    %393 = vector.broadcast %cst_85 : f32 to vector<8x64xf32>
    %394 = arith.addf %393, %392 : vector<8x64xf32>
    %395 = arith.divf %393, %394 : vector<8x64xf32>
    %396 = vector.extract_strided_slice %395 {offsets = [0, 0], sizes = [8, 32], strides = [1, 1]} : vector<8x64xf32> to vector<8x32xf32>
    %397 = vector.extract_strided_slice %395 {offsets = [0, 32], sizes = [8, 32], strides = [1, 1]} : vector<8x64xf32> to vector<8x32xf32>
    %398 = vector.extract_strided_slice %387 {offsets = [0, 64], sizes = [8, 32], strides = [1, 1]} : vector<8x96xf32> to vector<8x32xf32>
    %399 = vector.extract_strided_slice %384 {offsets = [0, 64], sizes = [8, 32], strides = [1, 1]} : vector<8x96xf32> to vector<8x32xf32>
    %400 = arith.mulf %396, %399 : vector<8x32xf32>
    %401 = arith.addf %398, %400 : vector<8x32xf32>
    %402 = math.tanh %401 : vector<8x32xf32>
    %cst_86 = arith.constant 1.000000e+00 : f32
    %403 = vector.broadcast %cst_86 : f32 to vector<8x32xf32>
    %404 = arith.subf %403, %397 : vector<8x32xf32>
    %405 = arith.mulf %404, %402 : vector<8x32xf32>
    %406 = arith.mulf %397, %382 : vector<8x32xf32>
    %407 = arith.addf %405, %406 : vector<8x32xf32>
    %cst_87 = arith.constant dense<0.000000e+00> : vector<8x96xf32>
    %408 = tpu.matmul %407, %7, %cst_87 {dimension_numbers = #tpu.dot_dimension_numbers<[1], [0], [0], [1], [0, 0, 1, 1], [], []>} : vector<8x32xf32>, vector<32x96xf32>, vector<8x96xf32> -> vector<8x96xf32>
    %409 = arith.addf %408, %256 : vector<8x96xf32>
    %410 = vector.extract_strided_slice %253 {offsets = [48, 0], sizes = [8, 96], strides = [1, 1]} : vector<64x96xf32> to vector<8x96xf32>
    %411 = vector.extract_strided_slice %254 {offsets = [8, 0], sizes = [8, 96], strides = [1, 1]} : vector<64x96xf32> to vector<8x96xf32>
    %412 = arith.addf %410, %411 : vector<8x96xf32>
    %413 = vector.extract_strided_slice %412 {offsets = [0, 0], sizes = [8, 64], strides = [1, 1]} : vector<8x96xf32> to vector<8x64xf32>
    %414 = vector.extract_strided_slice %409 {offsets = [0, 0], sizes = [8, 64], strides = [1, 1]} : vector<8x96xf32> to vector<8x64xf32>
    %415 = arith.addf %413, %414 : vector<8x64xf32>
    %416 = arith.negf %415 : vector<8x64xf32>
    %417 = math.exp %416 : vector<8x64xf32>
    %cst_88 = arith.constant 1.000000e+00 : f32
    %418 = vector.broadcast %cst_88 : f32 to vector<8x64xf32>
    %419 = arith.addf %418, %417 : vector<8x64xf32>
    %420 = arith.divf %418, %419 : vector<8x64xf32>
    %421 = vector.extract_strided_slice %420 {offsets = [0, 0], sizes = [8, 32], strides = [1, 1]} : vector<8x64xf32> to vector<8x32xf32>
    %422 = vector.extract_strided_slice %420 {offsets = [0, 32], sizes = [8, 32], strides = [1, 1]} : vector<8x64xf32> to vector<8x32xf32>
    %423 = vector.extract_strided_slice %412 {offsets = [0, 64], sizes = [8, 32], strides = [1, 1]} : vector<8x96xf32> to vector<8x32xf32>
    %424 = vector.extract_strided_slice %409 {offsets = [0, 64], sizes = [8, 32], strides = [1, 1]} : vector<8x96xf32> to vector<8x32xf32>
    %425 = arith.mulf %421, %424 : vector<8x32xf32>
    %426 = arith.addf %423, %425 : vector<8x32xf32>
    %427 = math.tanh %426 : vector<8x32xf32>
    %cst_89 = arith.constant 1.000000e+00 : f32
    %428 = vector.broadcast %cst_89 : f32 to vector<8x32xf32>
    %429 = arith.subf %428, %422 : vector<8x32xf32>
    %430 = arith.mulf %429, %427 : vector<8x32xf32>
    %431 = arith.mulf %422, %407 : vector<8x32xf32>
    %432 = arith.addf %430, %431 : vector<8x32xf32>
    %cst_90 = arith.constant dense<0.000000e+00> : vector<8x96xf32>
    %433 = tpu.matmul %432, %7, %cst_90 {dimension_numbers = #tpu.dot_dimension_numbers<[1], [0], [0], [1], [0, 0, 1, 1], [], []>} : vector<8x32xf32>, vector<32x96xf32>, vector<8x96xf32> -> vector<8x96xf32>
    %434 = arith.addf %433, %256 : vector<8x96xf32>
    %435 = vector.extract_strided_slice %253 {offsets = [56, 0], sizes = [8, 96], strides = [1, 1]} : vector<64x96xf32> to vector<8x96xf32>
    %436 = vector.extract_strided_slice %254 {offsets = [0, 0], sizes = [8, 96], strides = [1, 1]} : vector<64x96xf32> to vector<8x96xf32>
    %437 = arith.addf %435, %436 : vector<8x96xf32>
    %438 = vector.extract_strided_slice %437 {offsets = [0, 0], sizes = [8, 64], strides = [1, 1]} : vector<8x96xf32> to vector<8x64xf32>
    %439 = vector.extract_strided_slice %434 {offsets = [0, 0], sizes = [8, 64], strides = [1, 1]} : vector<8x96xf32> to vector<8x64xf32>
    %440 = arith.addf %438, %439 : vector<8x64xf32>
    %441 = arith.negf %440 : vector<8x64xf32>
    %442 = math.exp %441 : vector<8x64xf32>
    %cst_91 = arith.constant 1.000000e+00 : f32
    %443 = vector.broadcast %cst_91 : f32 to vector<8x64xf32>
    %444 = arith.addf %443, %442 : vector<8x64xf32>
    %445 = arith.divf %443, %444 : vector<8x64xf32>
    %446 = vector.extract_strided_slice %445 {offsets = [0, 0], sizes = [8, 32], strides = [1, 1]} : vector<8x64xf32> to vector<8x32xf32>
    %447 = vector.extract_strided_slice %445 {offsets = [0, 32], sizes = [8, 32], strides = [1, 1]} : vector<8x64xf32> to vector<8x32xf32>
    %448 = vector.extract_strided_slice %437 {offsets = [0, 64], sizes = [8, 32], strides = [1, 1]} : vector<8x96xf32> to vector<8x32xf32>
    %449 = vector.extract_strided_slice %434 {offsets = [0, 64], sizes = [8, 32], strides = [1, 1]} : vector<8x96xf32> to vector<8x32xf32>
    %450 = arith.mulf %446, %449 : vector<8x32xf32>
    %451 = arith.addf %448, %450 : vector<8x32xf32>
    %452 = math.tanh %451 : vector<8x32xf32>
    %cst_92 = arith.constant 1.000000e+00 : f32
    %453 = vector.broadcast %cst_92 : f32 to vector<8x32xf32>
    %454 = arith.subf %453, %447 : vector<8x32xf32>
    %455 = arith.mulf %454, %452 : vector<8x32xf32>
    %456 = arith.mulf %447, %432 : vector<8x32xf32>
    %457 = arith.addf %455, %456 : vector<8x32xf32>
    %c200 = arith.constant 200 : index
    %c0_93 = arith.constant 0 : index
    %458 = vector.load %arg1[%c200, %c0_93] : memref<240x96xf32, #tpu.memory_space<vmem>>, vector<32x96xf32>
    %459 = vector.extract_strided_slice %458 {offsets = [0, 0], sizes = [32, 4], strides = [1, 1]} : vector<32x96xf32> to vector<32x4xf32>
    %c232 = arith.constant 232 : index
    %c0_94 = arith.constant 0 : index
    %460 = vector.load %arg1[%c232, %c0_94] : memref<240x96xf32, #tpu.memory_space<vmem>>, vector<1x96xf32>
    %461 = vector.extract_strided_slice %460 {offsets = [0, 0], sizes = [1, 4], strides = [1, 1]} : vector<1x96xf32> to vector<1x4xf32>
    %cst_95 = arith.constant dense<0.000000e+00> : vector<8x4xf32>
    %462 = tpu.matmul %457, %459, %cst_95 {dimension_numbers = #tpu.dot_dimension_numbers<[1], [0], [0], [1], [0, 0, 1, 1], [], []>} : vector<8x32xf32>, vector<32x4xf32>, vector<8x4xf32> -> vector<8x4xf32>
    %463 = vector.broadcast %461 : vector<1x4xf32> to vector<8x4xf32>
    %464 = arith.addf %462, %463 : vector<8x4xf32>
    %cst_96 = arith.constant dense<0xFF800000> : vector<8xf32>
    %465 = vector.multi_reduction <maximumf>, %464, %cst_96 [1] : vector<8x4xf32> to vector<8xf32>
    %466 = vector.shape_cast %465 : vector<8xf32> to vector<8x1xf32>
    %467 = vector.broadcast %466 : vector<8x1xf32> to vector<8x4xf32>
    %468 = arith.subf %464, %467 : vector<8x4xf32>
    %469 = math.exp %468 : vector<8x4xf32>
    %cst_97 = arith.constant dense<0.000000e+00> : vector<8xf32>
    %470 = vector.multi_reduction <add>, %469, %cst_97 [1] : vector<8x4xf32> to vector<8xf32>
    %471 = vector.shape_cast %470 : vector<8xf32> to vector<8x1xf32>
    %472 = vector.broadcast %471 : vector<8x1xf32> to vector<8x4xf32>
    %473 = arith.divf %469, %472 : vector<8x4xf32>
    %474 = vector.extract_strided_slice %473 {offsets = [0, 0], sizes = [2, 4], strides = [1, 1]} : vector<8x4xf32> to vector<2x4xf32>
    %c0_98 = arith.constant 0 : index
    %c0_99 = arith.constant 0 : index
    %475 = vector.load %arg2[%c0_98, %c0_99] : memref<2x4xf32, #tpu.memory_space<vmem>>, vector<2x4xf32>
    tpu.vector_store %arg2[%c0_98, %c0_99], %474 {strides = array<i32>} : memref<2x4xf32, #tpu.memory_space<vmem>>, vector<2x4xf32>,
    return
  }
}

</mosaic_0001>

<bundles_post_ra>
// kernel: tpu_custom_call.1
= control target key start
LH: loop header
LB: loop body
LE: loop exit
PB: predicated region body
PF: predicated region fallthrough
CT: control target
= control target key end

     0   :  { %vm52_vm0 = vcmask 261120   ;;  %s3500_s0 = inlined_call_operand.vmem [shape: f32[64,32], index: 0, kind: input, shape index: {}]   ;;  %s3501_s1 = inlined_call_operand.vmem [shape: f32[240,96], index: 1, kind: input, shape index: {}]   ;;  %s3502_s2 = inlined_call_operand.hbm [shape: f32[2,4], index: 2, kind: output, shape index: {}]  }
   0x1   :  { %v12_v0 = vld [vmem:[%s3501_s1] sm:$0xff]  ;;  %v13_v1 = vld [vmem:[%s3501_s1 + $0x8] sm:$0xff]  ;;  %v14_v5 = vld [vmem:[%s3501_s1 + $0x10] sm:$0xff] }
   0x2   :  { %v16_v2 = vld [vmem:[%s3501_s1 + $0x20] sm:$0xff]  ;;  %v2775_v3 = vpack.c.bf16 %v13_v1, %v12_v0  ;;  %v17_v4 = vld [vmem:[%s3501_s1 + $0x28] sm:$0xff]  ;;  %v15_v6 = vld [vmem:[%s3501_s1 + $0x18] sm:$0xff] }
   0x3   :  { %v2783_v7 = vpack.c.bf16 %v17_v4, %v16_v2  ;;  %v2779_v8 = vpack.c.bf16 %v15_v6, %v14_v5  ;;  %v18_v9 = vld [vmem:[%s3501_s1 + $0x30] sm:$0xff]  ;;  %v19_v10 = vld [vmem:[%s3501_s1 + $0x38] sm:$0xff]  ;;  %v40_v11 = vld [vmem:[%s3500_s0] sm:$0xff] }
   0x4   :  { %2776 = vmatprep.subr.bf16.mxu0 %v2775_v3  ;;  %v2787_v12 = vpack.c.bf16 %v19_v10, %v18_v9  ;;  %2516 = vmatprep.mubr.msk.f32.mxu0 %vm52_vm0, %v40_v11  ;;  %v20_v13 = vld [vmem:[%s3501_s1 + $0x40] sm:$0xff]  ;;  %v21_v14 = vld [vmem:[%s3501_s1 + $0x48] sm:$0xff] }
   0x5   :  { %2784 = vmatprep.subr.bf16.mxu1 %v2783_v7  ;;  %2778 = vmatpush3.bf16.msra.mxu0 %v2775_v3 }
   0x6   :  { %2786 = vmatpush3.bf16.msra.mxu1 %v2783_v7  ;;  %2780 = vmatprep.subr.bf16.mxu0 %v2779_v8 }
   0x7   :  { %2788 = vmatprep.subr.bf16.mxu1 %v2787_v12  ;;  %2536 = vmatprep.mubr.msk.f32.mxu1 %vm52_vm0, %v40_v11 }
   0x8   :  { %7 = vsyncpa [#allocation4], 0  ;;  %v41_v15 = vld [vmem:[%s3500_s0 + $0x8] sm:$0xff]  ;;  %v3098_v16 = vpack.c.bf16 %v21_v14, %v20_v13  ;;  %v3039_v17 = vmov 0.0|0.0   ;;  %v42_v18 = vld [vmem:[%s3500_s0 + $0x10] sm:$0xff]  ;;  %vm3040_vm1 = vmmov 0  }
   0x9   :  { %2782 = vmatpush3.bf16.msra.mxu0 %v2779_v8  ;;  %v22_v19 = vld [vmem:[%s3501_s1 + $0x50] sm:$0xff]  ;;  %v23_v20 = vld [vmem:[%s3501_s1 + $0x58] sm:$0xff]  ;;  %v44_v22 = vld [vmem:[%s3500_s0 + $0x20] sm:$0xff]  ;;  %v3041_v27 = vmov 0.0   ;;  %s3042_s24 = smov 64   ;;  %s3043_s25 = smov 96  }
   0xa   :  { %2790 = vmatpush3.bf16.msra.mxu1 %v2787_v12  ;;  %2791 = vmatprep.subr.bf16.mxu0 %v3039_v17  ;;  %v43_v21 = vld [vmem:[%s3500_s0 + $0x18] sm:$0xff]  ;;  %v3122_v23 = vpack.c.bf16 %v23_v20, %v22_v19  ;;  %v45_v24 = vld [vmem:[%s3500_s0 + $0x28] sm:$0xff]  ;;  %v46_v25 = vld [vmem:[%s3500_s0 + $0x30] sm:$0xff]  ;;  %vm395_vm2 = vcmask 130048   ;;  %vm397_vm3 = vcmask 261248   ;;  %vm2279_vm4 = vcmask 31744  }
   0xb   :  { %2797 = vmatprep.subr.bf16.mxu1 %v3039_v17  ;;  %v47_v26 = vld [vmem:[%s3500_s0 + $0x38] sm:$0xff]  ;;  %v2307_v28 = vld [vmem:[%s3501_s1 + $0xc0] ss:$0 sm:$0xff]  ;;  %v3175_v58 = vld [vmem:[%s3501_s1 + $0xc1] ss:$0 sm:$0xff]  ;;  %vm2291_vm5 = vcmask 25600  }
   0xc   :  { %2517 = vmatmul.mubr.msk.f32.vlgmr.msra.gmra.mrb[0].mxu0 %vm52_vm0, %v41_v15 }
   0xd   :  { %2537 = vmatmul.mubr.msk.f32.vlgmr.msra.gmra.mrb[0].mxu1 %vm52_vm0, %v41_v15  ;;  %2793 = vmatpush3.bf16.msra.mxu0 %v3098_v16 }
   0xe   :  { %2519 = vmatprep.mubr.msk.f32.mxu0 %vm52_vm0, %v42_v18  ;;  %2539 = vmatprep.mubr.msk.f32.mxu1 %vm52_vm0, %v42_v18 }
   0xf   :  { %2794 = vmatprep.subr.bf16.mxu0 %v3039_v17  ;;  %2799 = vmatpush3.bf16.msra.mxu1 %v3098_v16 }
  0x10   :  { %2520 = vmatmul.mubr.msk.f32.gmra.mrb[2].mxu0 %vm52_vm0, %v43_v21  ;;  %2800 = vmatprep.subr.bf16.mxu1 %v3039_v17 }
  0x11   :  { %2540 = vmatmul.mubr.msk.f32.gmra.mrb[2].mxu1 %vm52_vm0, %v43_v21  ;;  %2522 = vmatprep.mubr.msk.f32.mxu0 %vm52_vm0, %v44_v22 }
  0x12   :  { %2542 = vmatprep.mubr.msk.f32.mxu1 %vm52_vm0, %v44_v22  ;;  %2796 = vmatpush3.bf16.msra.mxu0 %v3122_v23 }
  0x13   :  { %2802 = vmatpush3.bf16.msra.mxu1 %v3122_v23  ;;  %2803 = vmatprep.subr.bf16.mxu0 %v3039_v17 }
  0x14   :  { %2523 = vmatmul.mubr.msk.f32.gmra.mrb[4].mxu0 %vm52_vm0, %v45_v24  ;;  %2809 = vmatprep.subr.bf16.mxu1 %v3039_v17 }
  0x15   :  { %2543 = vmatmul.mubr.msk.f32.gmra.mrb[4].mxu1 %vm52_vm0, %v45_v24  ;;  %2525 = vmatprep.mubr.msk.f32.mxu0 %vm52_vm0, %v46_v25 }
  0x16   :  { %2545 = vmatprep.mubr.msk.f32.mxu1 %vm52_vm0, %v46_v25 }
  0x18   :  { %2526 = vmatmul.mubr.msk.f32.gmra.mrb[6].mxu0 %vm52_vm0, %v47_v26 }
  0x19   :  { %2546 = vmatmul.mubr.msk.f32.gmra.mrb[6].mxu1 %vm52_vm0, %v47_v26  ;;  %2556 = vmatprep.mubr.msk.f32.mxu0 %vm3040_vm1, %v3041_v27 }
  0x1a   :  { %2567 = vmatprep.mubr.msk.f32.mxu1 %vm3040_vm1, %v3041_v27 }
  0x1c   :  { %2557 = vmatmul.mubr.f32.vlgmr.msra.gmra.mrb[8].mxu0 %v3041_v27 }
  0x1d   :  { %2805 = vmatpush3.bf16.msra.mxu0 %v3098_v16  ;;  %2578 = vmatprep.mubr.msk.f32.mxu0 %vm3040_vm1, %v3041_v27 }
  0x1e   :  { %2806 = vmatprep.subr.bf16.mxu0 %v3039_v17 }
  0x21   :  { %2808 = vmatpush3.bf16.msra.mxu0 %v3122_v23 }
  0x22   :  { %2815 = vmatprep.subr.bf16.mxu0 %v3039_v17 }
  0xdf   :  { %v2518_v29 = vpop.f32.mrb[0].mxu0 }
  0xe0   :  { %v149_v30 = vadd.f32 %v2518_v29, %v2307_v28  ;;  %v143_v31 = vpop.f32.mrb[1].mxu0  ;;  %v2538_v32 = vpop.f32.mrb[0].mxu1 }
  0xe1   :  { %v248_v33 = vpop.f32.mrb[1].mxu1  ;;  %v144_v49 = vadd.f32 %v2307_v28, %v143_v31 }
  0xe3   :  { %v2521_v34 = vpop.f32.mrb[2].mxu0 }
  0xe4   :  { %v159_v35 = vadd.f32 %v2521_v34, %v2307_v28  ;;  %v153_v36 = vpop.f32.mrb[3].mxu0  ;;  %v2541_v37 = vpop.f32.mrb[2].mxu1 }
  0xe5   :  { %v154_v38 = vadd.f32 %v2307_v28, %v153_v36  ;;  %v258_v39 = vpop.f32.mrb[3].mxu1 }
  0xe7   :  { %v2524_v40 = vpop.f32.mrb[4].mxu0 }
  0xe8   :  { %v169_v41 = vadd.f32 %v2524_v40, %v2307_v28  ;;  %v2544_v42 = vpop.f32.mrb[4].mxu1  ;;  %v163_v43 = vpop.f32.mrb[5].mxu0 }
  0xe9   :  { %v3164_v44 = vadd.f32 %v2544_v42, %v154_v38  ;;  %v164_v45 = vadd.f32 %v2307_v28, %v163_v43  ;;  %v268_v46 = vpop.f32.mrb[5].mxu1 }
  0xea   :  { %v3166_v47 = vadd.f32 %v258_v39, %v169_v41  ;;  %v3168_v48 = vadd.f32 %v268_v46, %v159_v35 }
  0xeb   :  { %v3170_v50 = vadd.f32 %v2541_v37, %v164_v45  ;;  %v2527_v51 = vpop.f32.mrb[6].mxu0 }
  0xec   :  { %v179_v52 = vadd.f32 %v2527_v51, %v2307_v28  ;;  %v2547_v53 = vpop.f32.mrb[6].mxu1  ;;  %v173_v54 = vpop.f32.mrb[7].mxu0 }
  0xed   :  { %v364_v55 = vadd.f32 %v2547_v53, %v144_v49  ;;  %v174_v56 = vadd.f32 %v2307_v28, %v173_v54  ;;  %v278_v57 = vpop.f32.mrb[7].mxu1 }
  0xee   :  { %v3177_v59 = vadd.f32 %v248_v33, %v179_v52  ;;  %v471_v60 = vadd.f32 %v278_v57, %v149_v30 }
  0xef   :  { %v3179_v61 = vadd.f32 %v2538_v32, %v174_v56  ;;  %v360_v62 = vpop.f32.mrb[8].mxu0 }
  0xf0   :  { %v361_v63 = vadd.f32 %v3175_v58, %v360_v62  ;;  %v2558_v0 = vpop.f32.mrb[9].mxu0 }
  0xf2   :  { %373 = vrot.lane.b32.xlu0 %v361_v63, %s3042_s24  ;;  %v365_v1 = vadd.f32 %v364_v55, %v361_v63 }
  0xf4   :  { %v2325_v2 = vmul.f32 -1.442695, %v365_v1 }
  0xf6   :  { %2915 = vpow2.f32 %v2325_v2 }
 0x100   :  { %v2916_v3 = vpop.eup %2915 }
 0x101   :  { %v369_v4 = vadd.f32 1.0, %v2916_v3 }
 0x103   :  { %2917 = vrcp.f32 %v369_v4 }
 0x10d   :  { %v2918_v5 = vpop.eup %2917 }
 0x10e   :  { %v383_v11 = vsub.f32 1.0, %v2918_v5  ;;  %v389_v13 = vmul.f32 0.0, %v2918_v5 }
 0x164   :  { %v374_v6 = vpop.permute.xlu0 %373 }
 0x165   :  { %v376_v7 = vmul.f32 %v2918_v5, %v374_v6 }
 0x167   :  { %378 = vrot.lane.b32.xlu0 %v376_v7, %s3042_s24 }
 0x1d9   :  { %v379_v8 = vpop.permute.xlu0 %378 }
 0x1da   :  { %v381_v9 = vadd.f32 %v379_v8, %v364_v55 }
 0x1dc   :  { %2919 = vtanh.f32 %v381_v9 }
 0x1e6   :  { %v2920_v10 = vpop.eup %2919 }
 0x1e7   :  { %385 = vrot.lane.b32.xlu1 %v2920_v10, %s3043_s25 }
 0x259   :  { %v386_v12 = vpop.permute.xlu1 %385 }
 0x25a   :  { %v388_v14 = vmul.f32 %v386_v12, %v383_v11 }
 0x25c   :  { %v390_v15 = vadd.f32 %v389_v13, %v388_v14 }
 0x25e   :  { %392 = vrot.lane.b32.xlu1 %v390_v15, %s3043_s25 }
 0x2d0   :  { %v393_v18 = vpop.permute.xlu1 %392 }
 0x2d1   :  { %396 = vst.msk [vmem:[#allocation2] sm:$0xff] %vm395_vm2, %v393_v18  ;;  %2568 = vmatmul.mubr.msk.f32.vlgmr.msra.gmra.mrb[8].mxu1 %vm52_vm0, %v393_v18 }
 0x2d2   :  { %398 = vst.msk [vmem:[#allocation2 + $0x38] sm:$0xff] %vm397_vm3, %v393_v18  ;;  %2811 = vmatpush3.bf16.msra.mxu1 %v3098_v16  ;;  %2589 = vmatprep.mubr.msk.f32.mxu1 %vm3040_vm1, %v3041_v27 }
 0x2d3   :  { %2812 = vmatprep.subr.bf16.mxu1 %v3039_v17 }
 0x2d6   :  { %2814 = vmatpush3.bf16.msra.mxu1 %v3122_v23 }
 0x2d7   :  { %2821 = vmatprep.subr.bf16.mxu1 %v3039_v17 }
 0x3a4   :  { %v467_v19 = vpop.f32.mrb[8].mxu1 }
 0x3a5   :  { %v468_v20 = vadd.f32 %v3175_v58, %v467_v19  ;;  %v2569_v21 = vpop.f32.mrb[9].mxu1 }
 0x3a7   :  { %480 = vrot.lane.b32.xlu0 %v468_v20, %s3042_s24  ;;  %v472_v22 = vadd.f32 %v471_v60, %v468_v20 }
 0x3a9   :  { %v2327_v24 = vmul.f32 -1.442695, %v472_v22 }
 0x3ab   :  { %2921 = vpow2.f32 %v2327_v24 }
 0x3b5   :  { %v2922_v25 = vpop.eup %2921 }
 0x3b6   :  { %v476_v26 = vadd.f32 1.0, %v2922_v25 }
 0x3b8   :  { %2923 = vrcp.f32 %v476_v26 }
 0x3c2   :  { %v2924_v28 = vpop.eup %2923 }
 0x3c3   :  { %v490_v34 = vsub.f32 1.0, %v2924_v28  ;;  %v496_v36 = vmul.f32 %v2924_v28, %v390_v15 }
 0x419   :  { %v481_v29 = vpop.permute.xlu0 %480 }
 0x41a   :  { %v483_v30 = vmul.f32 %v2924_v28, %v481_v29 }
 0x41c   :  { %485 = vrot.lane.b32.xlu1 %v483_v30, %s3042_s24 }
 0x48e   :  { %v486_v31 = vpop.permute.xlu1 %485 }
 0x48f   :  { %v488_v32 = vadd.f32 %v486_v31, %v471_v60 }
 0x491   :  { %2925 = vtanh.f32 %v488_v32 }
 0x49b   :  { %v2926_v33 = vpop.eup %2925 }
 0x49c   :  { %492 = vrot.lane.b32.xlu0 %v2926_v33, %s3043_s25 }
 0x50e   :  { %v493_v35 = vpop.permute.xlu0 %492 }
 0x50f   :  { %v495_v37 = vmul.f32 %v493_v35, %v490_v34 }
 0x511   :  { %v497_v38 = vadd.f32 %v496_v36, %v495_v37 }
 0x513   :  { %499 = vrot.lane.b32.xlu1 %v497_v38, %s3043_s25 }
 0x585   :  { %v500_v39 = vpop.permute.xlu1 %499 }
 0x586   :  { %502 = vst.msk [vmem:[#allocation2 + $0x8] sm:$0xff] %vm395_vm2, %v500_v39  ;;  %2579 = vmatmul.mubr.msk.f32.vlgmr.msra.gmra.mrb[10].mxu0 %vm52_vm0, %v500_v39 }
 0x587   :  { %503 = vst.msk [vmem:[#allocation2 + $0x30] sm:$0xff] %vm397_vm3, %v500_v39  ;;  %2817 = vmatpush3.bf16.msra.mxu0 %v3098_v16  ;;  %2600 = vmatprep.mubr.msk.f32.mxu0 %vm3040_vm1, %v3041_v27 }
 0x588   :  { %2818 = vmatprep.subr.bf16.mxu0 %v3039_v17 }
 0x58b   :  { %2820 = vmatpush3.bf16.msra.mxu0 %v3122_v23 }
 0x58c   :  { %2827 = vmatprep.subr.bf16.mxu0 %v3039_v17 }
 0x659   :  { %v572_v40 = vpop.f32.mrb[10].mxu0 }
 0x65a   :  { %v573_v41 = vadd.f32 %v3175_v58, %v572_v40  ;;  %v2580_v42 = vpop.f32.mrb[11].mxu0 }
 0x65c   :  { %585 = vrot.lane.b32.xlu0 %v573_v41, %s3042_s24  ;;  %v577_v43 = vadd.f32 %v3164_v44, %v573_v41 }
 0x65e   :  { %v2329_v45 = vmul.f32 -1.442695, %v577_v43 }
 0x660   :  { %2927 = vpow2.f32 %v2329_v45 }
 0x66a   :  { %v2928_v46 = vpop.eup %2927 }
 0x66b   :  { %v581_v49 = vadd.f32 1.0, %v2928_v46 }
 0x66d   :  { %2929 = vrcp.f32 %v581_v49 }
 0x677   :  { %v2930_v51 = vpop.eup %2929 }
 0x678   :  { %v595_v57 = vsub.f32 1.0, %v2930_v51  ;;  %v601_v62 = vmul.f32 %v2930_v51, %v497_v38 }
 0x6ce   :  { %v586_v52 = vpop.permute.xlu0 %585 }
 0x6cf   :  { %v588_v53 = vmul.f32 %v2930_v51, %v586_v52 }
 0x6d1   :  { %590 = vrot.lane.b32.xlu1 %v588_v53, %s3042_s24 }
 0x743   :  { %v591_v54 = vpop.permute.xlu1 %590 }
 0x744   :  { %v593_v55 = vadd.f32 %v591_v54, %v3164_v44 }
 0x746   :  { %2931 = vtanh.f32 %v593_v55 }
 0x750   :  { %v2932_v56 = vpop.eup %2931 }
 0x751   :  { %597 = vrot.lane.b32.xlu0 %v2932_v56, %s3043_s25 }
 0x7c3   :  { %v598_v60 = vpop.permute.xlu0 %597 }
 0x7c4   :  { %v600_v63 = vmul.f32 %v598_v60, %v595_v57 }
 0x7c6   :  { %v602_v0 = vadd.f32 %v601_v62, %v600_v63 }
 0x7c8   :  { %604 = vrot.lane.b32.xlu1 %v602_v0, %s3043_s25 }
 0x83a   :  { %v605_v1 = vpop.permute.xlu1 %604 }
 0x83b   :  { %607 = vst.msk [vmem:[#allocation2 + $0x10] sm:$0xff] %vm395_vm2, %v605_v1  ;;  %2590 = vmatmul.mubr.msk.f32.vlgmr.msra.gmra.mrb[10].mxu1 %vm52_vm0, %v605_v1 }
 0x83c   :  { %608 = vst.msk [vmem:[#allocation2 + $0x28] sm:$0xff] %vm397_vm3, %v605_v1  ;;  %2823 = vmatpush3.bf16.msra.mxu1 %v3098_v16  ;;  %2611 = vmatprep.mubr.msk.f32.mxu1 %vm3040_vm1, %v3041_v27 }
 0x83d   :  { %2824 = vmatprep.subr.bf16.mxu1 %v3039_v17 }
 0x840   :  { %2826 = vmatpush3.bf16.msra.mxu1 %v3122_v23 }
 0x841   :  { %2833 = vmatprep.subr.bf16.mxu1 %v3039_v17 }
 0x90e   :  { %v677_v44 = vpop.f32.mrb[10].mxu1 }
 0x90f   :  { %v678_v2 = vadd.f32 %v3175_v58, %v677_v44  ;;  %v2591_v3 = vpop.f32.mrb[11].mxu1 }
 0x911   :  { %690 = vrot.lane.b32.xlu0 %v678_v2, %s3042_s24  ;;  %v682_v4 = vadd.f32 %v3168_v48, %v678_v2 }
 0x913   :  { %v2331_v5 = vmul.f32 -1.442695, %v682_v4 }
 0x915   :  { %2933 = vpow2.f32 %v2331_v5 }
 0x91f   :  { %v2934_v6 = vpop.eup %2933 }
 0x920   :  { %v686_v7 = vadd.f32 1.0, %v2934_v6 }
 0x922   :  { %2935 = vrcp.f32 %v686_v7 }
 0x92c   :  { %v2936_v8 = vpop.eup %2935 }
 0x92d   :  { %v700_v14 = vsub.f32 1.0, %v2936_v8  ;;  %v706_v18 = vmul.f32 %v2936_v8, %v602_v0 }
 0x983   :  { %v691_v9 = vpop.permute.xlu0 %690 }
 0x984   :  { %v693_v10 = vmul.f32 %v2936_v8, %v691_v9 }
 0x986   :  { %695 = vrot.lane.b32.xlu1 %v693_v10, %s3042_s24 }
 0x9f8   :  { %v696_v11 = vpop.permute.xlu1 %695 }
 0x9f9   :  { %v698_v12 = vadd.f32 %v696_v11, %v3168_v48 }
 0x9fb   :  { %2937 = vtanh.f32 %v698_v12 }
 0xa05   :  { %v2938_v13 = vpop.eup %2937 }
 0xa06   :  { %702 = vrot.lane.b32.xlu0 %v2938_v13, %s3043_s25 }
 0xa78   :  { %v703_v15 = vpop.permute.xlu0 %702 }
 0xa79   :  { %v705_v19 = vmul.f32 %v703_v15, %v700_v14 }
 0xa7b   :  { %v707_v20 = vadd.f32 %v706_v18, %v705_v19 }
 0xa7d   :  { %709 = vrot.lane.b32.xlu1 %v707_v20, %s3043_s25 }
 0xaef   :  { %v710_v21 = vpop.permute.xlu1 %709 }
 0xaf0   :  { %712 = vst.msk [vmem:[#allocation2 + $0x18] sm:$0xff] %vm395_vm2, %v710_v21  ;;  %2601 = vmatmul.mubr.msk.f32.vlgmr.msra.gmra.mrb[12].mxu0 %vm52_vm0, %v710_v21 }
 0xaf1   :  { %713 = vst.msk [vmem:[#allocation2 + $0x20] sm:$0xff] %vm397_vm3, %v710_v21  ;;  %2829 = vmatpush3.bf16.msra.mxu0 %v3098_v16  ;;  %2622 = vmatprep.mubr.msk.f32.mxu0 %vm3040_vm1, %v3041_v27 }
 0xaf2   :  { %2830 = vmatprep.subr.bf16.mxu0 %v3039_v17 }
 0xaf5   :  { %2832 = vmatpush3.bf16.msra.mxu0 %v3122_v23 }
 0xbc3   :  { %v782_v48 = vpop.f32.mrb[12].mxu0 }
 0xbc4   :  { %v783_v22 = vadd.f32 %v3175_v58, %v782_v48  ;;  %v2602_v24 = vpop.f32.mrb[13].mxu0 }
 0xbc6   :  { %795 = vrot.lane.b32.xlu0 %v783_v22, %s3042_s24  ;;  %v787_v25 = vadd.f32 %v3170_v50, %v783_v22 }
 0xbc8   :  { %v2333_v26 = vmul.f32 -1.442695, %v787_v25 }
 0xbca   :  { %2939 = vpow2.f32 %v2333_v26 }
 0xbd4   :  { %v2940_v28 = vpop.eup %2939 }
 0xbd5   :  { %v791_v29 = vadd.f32 1.0, %v2940_v28 }
 0xbd7   :  { %2941 = vrcp.f32 %v791_v29 }
 0xbe1   :  { %v2942_v30 = vpop.eup %2941 }
 0xbe2   :  { %v805_v36 = vsub.f32 1.0, %v2942_v30  ;;  %v811_v38 = vmul.f32 %v2942_v30, %v707_v20 }
 0xc38   :  { %v796_v31 = vpop.permute.xlu0 %795 }
 0xc39   :  { %v798_v32 = vmul.f32 %v2942_v30, %v796_v31 }
 0xc3b   :  { %800 = vrot.lane.b32.xlu1 %v798_v32, %s3042_s24  ;;  %v26_v32 = vld [vmem:[%s3501_s1 + $0x60] sm:$0xff] }
 0xcad   :  { %v801_v33 = vpop.permute.xlu1 %800 }
 0xcae   :  { %v803_v34 = vadd.f32 %v801_v33, %v3170_v50  ;;  %v27_v33 = vld [vmem:[%s3501_s1 + $0x68] sm:$0xff] }
 0xcb0   :  { %2943 = vtanh.f32 %v803_v34  ;;  %v30_v34 = vld [vmem:[%s3501_s1 + $0x80] sm:$0xff] }
 0xcba   :  { %v2944_v35 = vpop.eup %2943 }
 0xcbb   :  { %807 = vrot.lane.b32.xlu0 %v2944_v35, %s3043_s25  ;;  %v2839_v35 = vpack.c.bf16 %v27_v33, %v26_v32  ;;  %v3375_v33 = vld [vmem:[%s3501_s1 + $0xc3] ss:$0 sm:$0xff] }
 0xcbd   :  { %2840 = vmatprep.subr.bf16.mxu0 %v2839_v35 }
 0xd2d   :  { %v808_v37 = vpop.permute.xlu0 %807 }
 0xd2e   :  { %v810_v39 = vmul.f32 %v808_v37, %v805_v36  ;;  %v28_v36 = vld [vmem:[%s3501_s1 + $0x70] sm:$0xff]  ;;  %v29_v37 = vld [vmem:[%s3501_s1 + $0x78] sm:$0xff] }
 0xd30   :  { %v812_v40 = vadd.f32 %v811_v38, %v810_v39  ;;  %v2843_v39 = vpack.c.bf16 %v29_v37, %v28_v36 }
 0xd32   :  { %814 = vrot.lane.b32.xlu1 %v812_v40, %s3043_s25 }
 0xda4   :  { %v815_v41 = vpop.permute.xlu1 %814 }
 0xda5   :  { %817 = vst.msk [vmem:[#allocation2 + $0x20] sm:$0xff] %vm395_vm2, %v815_v41  ;;  %2612 = vmatmul.mubr.msk.f32.vlgmr.msra.gmra.mrb[12].mxu1 %vm52_vm0, %v815_v41 }
 0xda6   :  { %818 = vst.msk [vmem:[#allocation2 + $0x18] sm:$0xff] %vm397_vm3, %v815_v41  ;;  %2835 = vmatpush3.bf16.msra.mxu1 %v3098_v16  ;;  %2633 = vmatprep.mubr.msk.f32.mxu1 %vm3040_vm1, %v3041_v27  ;;  %v33_v41 = vld [vmem:[%s3501_s1 + $0x98] sm:$0xff] }
 0xda7   :  { %2836 = vmatprep.subr.bf16.mxu1 %v3039_v17 }
 0xdaa   :  { %2838 = vmatpush3.bf16.msra.mxu1 %v3122_v23 }
 0xe78   :  { %v887_v50 = vpop.f32.mrb[12].mxu1 }
 0xe79   :  { %v888_v42 = vadd.f32 %v3175_v58, %v887_v50  ;;  %v2613_v43 = vpop.f32.mrb[13].mxu1 }
 0xe7b   :  { %900 = vrot.lane.b32.xlu0 %v888_v42, %s3042_s24  ;;  %v892_v45 = vadd.f32 %v3166_v47, %v888_v42 }
 0xe7d   :  { %v2335_v46 = vmul.f32 -1.442695, %v892_v45 }
 0xe7f   :  { %2945 = vpow2.f32 %v2335_v46 }
 0xe89   :  { %v2946_v49 = vpop.eup %2945 }
 0xe8a   :  { %v896_v51 = vadd.f32 1.0, %v2946_v49 }
 0xe8c   :  { %2947 = vrcp.f32 %v896_v51 }
 0xe96   :  { %v2948_v16 = vpop.eup %2947 }
 0xe97   :  { %v910_v56 = vsub.f32 1.0, %v2948_v16  ;;  %v916_v60 = vmul.f32 %v2948_v16, %v812_v40  ;;  %v32_v40 = vld [vmem:[%s3501_s1 + $0x90] sm:$0xff] }
 0xe98   :  { %v2851_v50 = vpack.c.bf16 %v33_v41, %v32_v40 }
 0xeed   :  { %v901_v52 = vpop.permute.xlu0 %900 }
 0xeee   :  { %v903_v53 = vmul.f32 %v2948_v16, %v901_v52  ;;  %v34_v16 = vld [vmem:[%s3501_s1 + $0xa0] sm:$0xff]  ;;  %v35_v52 = vld [vmem:[%s3501_s1 + $0xa8] sm:$0xff] }
 0xef0   :  { %905 = vrot.lane.b32.xlu1 %v903_v53, %s3042_s24 }
 0xf62   :  { %v906_v54 = vpop.permute.xlu1 %905 }
 0xf63   :  { %v908_v23 = vadd.f32 %v906_v54, %v3166_v47  ;;  %v3316_v54 = vpack.c.bf16 %v35_v52, %v34_v16 }
 0xf65   :  { %2949 = vtanh.f32 %v908_v23 }
 0xf6f   :  { %v2950_v55 = vpop.eup %2949 }
 0xf70   :  { %912 = vrot.lane.b32.xlu0 %v2950_v55, %s3043_s25  ;;  %v36_v55 = vld [vmem:[%s3501_s1 + $0xb0] sm:$0xff] }
 0xfe2   :  { %v913_v57 = vpop.permute.xlu0 %912 }
 0xfe3   :  { %v915_v62 = vmul.f32 %v913_v57, %v910_v56  ;;  %v37_v56 = vld [vmem:[%s3501_s1 + $0xb8] sm:$0xff] }
 0xfe5   :  { %v917_v63 = vadd.f32 %v916_v60, %v915_v62  ;;  %v3331_v60 = vpack.c.bf16 %v37_v56, %v36_v55  ;;  %v1137_v62 = vld [vmem:[#allocation2 + $0x18] sm:$0xff] }
 0xfe7   :  { %919 = vrot.lane.b32.xlu1 %v917_v63, %s3043_s25 }
0x1059   :  { %v920_v0 = vpop.permute.xlu1 %919 }
0x105a   :  { %922 = vst.msk [vmem:[#allocation2 + $0x28] sm:$0xff] %vm395_vm2, %v920_v0  ;;  %2623 = vmatmul.mubr.msk.f32.vlgmr.msra.gmra.mrb[14].mxu0 %vm52_vm0, %v920_v0 }
0x105b   :  { %923 = vst.msk [vmem:[#allocation2 + $0x10] sm:$0xff] %vm397_vm3, %v920_v0  ;;  %2842 = vmatpush3.bf16.msra.mxu0 %v2839_v35 }
0x105c   :  { %2844 = vmatprep.subr.bf16.mxu0 %v2843_v39 }
0x105f   :  { %2846 = vmatpush3.bf16.msra.mxu0 %v2843_v39 }
0x1060   :  { %2855 = vmatprep.subr.bf16.mxu0 %v3039_v17 }
0x1061   :  { %v1139_v0 = vld [vmem:[#allocation2 + $0x28] sm:$0xff] }
0x1062   :  { %v1136_v57 = vld [vmem:[#allocation2 + $0x10] sm:$0xff] }
0x112d   :  { %v992_v1 = vpop.f32.mrb[14].mxu0 }
0x112e   :  { %v993_v47 = vadd.f32 %v3175_v58, %v992_v1  ;;  %v2624_v44 = vpop.f32.mrb[15].mxu0 }
0x112f   :  { %v2340_v44 = vld [vmem:[%s3501_s1 + $0xc2] ss:$0 sm:$0xff] }
0x1130   :  { %1005 = vrot.lane.b32.xlu0 %v993_v47, %s3042_s24  ;;  %v997_v2 = vadd.f32 %v3179_v61, %v993_v47 }
0x1132   :  { %v2337_v3 = vmul.f32 -1.442695, %v997_v2 }
0x1134   :  { %2951 = vpow2.f32 %v2337_v3 }
0x113e   :  { %v2952_v4 = vpop.eup %2951 }
0x113f   :  { %v1001_v5 = vadd.f32 1.0, %v2952_v4 }
0x1141   :  { %2953 = vrcp.f32 %v1001_v5 }
0x114b   :  { %v2954_v6 = vpop.eup %2953 }
0x114c   :  { %v1015_v12 = vsub.f32 1.0, %v2954_v6  ;;  %v1021_v14 = vmul.f32 %v2954_v6, %v917_v63  ;;  %v1138_v63 = vld [vmem:[#allocation2 + $0x20] sm:$0xff] }
0x11a2   :  { %v1006_v7 = vpop.permute.xlu0 %1005 }
0x11a3   :  { %v1008_v8 = vmul.f32 %v2954_v6, %v1006_v7 }
0x11a5   :  { %1010 = vrot.lane.b32.xlu1 %v1008_v8, %s3042_s24 }
0x1217   :  { %v1011_v9 = vpop.permute.xlu1 %1010 }
0x1218   :  { %v1013_v10 = vadd.f32 %v1011_v9, %v3179_v61 }
0x121a   :  { %2955 = vtanh.f32 %v1013_v10 }
0x1224   :  { %v2956_v11 = vpop.eup %2955 }
0x1225   :  { %1017 = vrot.lane.b32.xlu0 %v2956_v11, %s3043_s25 }
0x1297   :  { %v1018_v13 = vpop.permute.xlu0 %1017 }
0x1298   :  { %v1020_v15 = vmul.f32 %v1018_v13, %v1015_v12 }
0x129a   :  { %v1022_v18 = vadd.f32 %v1021_v14, %v1020_v15 }
0x129c   :  { %1024 = vrot.lane.b32.xlu1 %v1022_v18, %s3043_s25 }
0x130e   :  { %v1025_v19 = vpop.permute.xlu1 %1024 }
0x130f   :  { %1027 = vst.msk [vmem:[#allocation2 + $0x30] sm:$0xff] %vm395_vm2, %v1025_v19  ;;  %2634 = vmatmul.mubr.msk.f32.vlgmr.msra.gmra.mrb[14].mxu1 %vm52_vm0, %v1025_v19 }
0x1310   :  { %1028 = vst.msk [vmem:[#allocation2 + $0x8] sm:$0xff] %vm397_vm3, %v1025_v19 }
0x1316   :  { %v1140_v1 = vld [vmem:[#allocation2 + $0x30] sm:$0xff] }
0x1317   :  { %v1135_v23 = vld [vmem:[#allocation2 + $0x8] sm:$0xff] }
0x13e2   :  { %v1097_v20 = vpop.f32.mrb[14].mxu1 }
0x13e3   :  { %v1098_v61 = vadd.f32 %v3175_v58, %v1097_v20  ;;  %v2635_v21 = vpop.f32.mrb[15].mxu1 }
0x13e5   :  { %1110 = vrot.lane.b32.xlu0 %v1098_v61, %s3042_s24  ;;  %v1102_v48 = vadd.f32 %v3177_v59, %v1098_v61 }
0x13e7   :  { %v2339_v22 = vmul.f32 -1.442695, %v1102_v48 }
0x13e9   :  { %2957 = vpow2.f32 %v2339_v22 }
0x13f3   :  { %v2958_v24 = vpop.eup %2957 }
0x13f4   :  { %v1106_v25 = vadd.f32 1.0, %v2958_v24 }
0x13f6   :  { %2959 = vrcp.f32 %v1106_v25 }
0x1400   :  { %v2960_v26 = vpop.eup %2959 }
0x1401   :  { %v1120_v42 = vsub.f32 1.0, %v2960_v26  ;;  %v1126_v45 = vmul.f32 %v2960_v26, %v1022_v18 }
0x1457   :  { %v1111_v28 = vpop.permute.xlu0 %1110 }
0x1458   :  { %v1113_v29 = vmul.f32 %v2960_v26, %v1111_v28 }
0x145a   :  { %1115 = vrot.lane.b32.xlu1 %v1113_v29, %s3042_s24 }
0x14cc   :  { %v1116_v30 = vpop.permute.xlu1 %1115 }
0x14cd   :  { %v1118_v31 = vadd.f32 %v1116_v30, %v3177_v59  ;;  %v31_v59 = vld [vmem:[%s3501_s1 + $0x88] sm:$0xff] }
0x14ce   :  { %v2847_v38 = vpack.c.bf16 %v31_v59, %v30_v34 }
0x14cf   :  { %2961 = vtanh.f32 %v1118_v31 }
0x14d0   :  { %2848 = vmatprep.subr.bf16.mxu1 %v2847_v38 }
0x14d1   :  { %2850 = vmatpush3.bf16.msra.mxu1 %v2847_v38 }
0x14d2   :  { %2852 = vmatprep.subr.bf16.mxu1 %v2851_v50 }
0x14d5   :  { %2854 = vmatpush3.bf16.msra.mxu1 %v2851_v50 }
0x14d6   :  { %2861 = vmatprep.subr.bf16.mxu1 %v3039_v17 }
0x14d9   :  { %v2962_v58 = vpop.eup %2961 }
0x14da   :  { %1122 = vrot.lane.b32.xlu0 %v2962_v58, %s3043_s25 }
0x154c   :  { %v1123_v43 = vpop.permute.xlu0 %1122 }
0x154d   :  { %v1125_v46 = vmul.f32 %v1123_v43, %v1120_v42 }
0x154f   :  { %v1127_v49 = vadd.f32 %v1126_v45, %v1125_v46 }
0x1551   :  { %1129 = vrot.lane.b32.xlu1 %v1127_v49, %s3043_s25 }
0x15c3   :  { %v1130_v51 = vpop.permute.xlu1 %1129 }
0x15c4   :  { %1132 = vst.msk [vmem:[#allocation2 + $0x38] sm:$0xff] %vm395_vm2, %v1130_v51 }
0x15c5   :  { %1133 = vst.msk [vmem:[#allocation2] sm:$0xff] %vm397_vm3, %v1130_v51 }
0x15cb   :  { %v1141_v47 = vld [vmem:[#allocation2 + $0x38] sm:$0xff] }
0x15cc   :  { %v1134_v53 = vld [vmem:[#allocation2] sm:$0xff] }
0x15cd   :  { %2644 = vmatprep.mubr.msk.f32.mxu0 %vm52_vm0, %v1134_v53  ;;  %2664 = vmatprep.mubr.msk.f32.mxu1 %vm52_vm0, %v1134_v53 }
0x15ce   :  { %2645 = vmatmul.mubr.msk.f32.vlgmr.msra.gmra.mrb[16].mxu0 %vm52_vm0, %v1135_v23  ;;  %2665 = vmatmul.mubr.msk.f32.vlgmr.msra.gmra.mrb[16].mxu1 %vm52_vm0, %v1135_v23 }
0x15cf   :  { %2647 = vmatprep.mubr.msk.f32.mxu0 %vm52_vm0, %v1136_v57  ;;  %2667 = vmatprep.mubr.msk.f32.mxu1 %vm52_vm0, %v1136_v57 }
0x15d0   :  { %2857 = vmatpush3.bf16.msra.mxu0 %v3316_v54  ;;  %2863 = vmatpush3.bf16.msra.mxu1 %v3316_v54 }
0x15d1   :  { %2858 = vmatprep.subr.bf16.mxu0 %v3039_v17  ;;  %2864 = vmatprep.subr.bf16.mxu1 %v3039_v17 }
0x15d2   :  { %2648 = vmatmul.mubr.msk.f32.gmra.mrb[18].mxu0 %vm52_vm0, %v1137_v62  ;;  %2668 = vmatmul.mubr.msk.f32.gmra.mrb[18].mxu1 %vm52_vm0, %v1137_v62 }
0x15d3   :  { %2650 = vmatprep.mubr.msk.f32.mxu0 %vm52_vm0, %v1138_v63  ;;  %2670 = vmatprep.mubr.msk.f32.mxu1 %vm52_vm0, %v1138_v63 }
0x15d4   :  { %2860 = vmatpush3.bf16.msra.mxu0 %v3331_v60  ;;  %2866 = vmatpush3.bf16.msra.mxu1 %v3331_v60 }
0x15d5   :  { %2867 = vmatprep.subr.bf16.mxu0 %v3039_v17  ;;  %2873 = vmatprep.subr.bf16.mxu1 %v3039_v17 }
0x15d6   :  { %2651 = vmatmul.mubr.msk.f32.gmra.mrb[20].mxu0 %vm52_vm0, %v1139_v0  ;;  %2671 = vmatmul.mubr.msk.f32.gmra.mrb[20].mxu1 %vm52_vm0, %v1139_v0 }
0x15d7   :  { %2653 = vmatprep.mubr.msk.f32.mxu0 %vm52_vm0, %v1140_v1  ;;  %2673 = vmatprep.mubr.msk.f32.mxu1 %vm52_vm0, %v1140_v1 }
0x15da   :  { %2654 = vmatmul.mubr.msk.f32.gmra.mrb[22].mxu0 %vm52_vm0, %v1141_v47  ;;  %2674 = vmatmul.mubr.msk.f32.gmra.mrb[22].mxu1 %vm52_vm0, %v1141_v47 }
0x15db   :  { %2684 = vmatprep.mubr.msk.f32.mxu0 %vm3040_vm1, %v3041_v27  ;;  %2695 = vmatprep.mubr.msk.f32.mxu1 %vm3040_vm1, %v3041_v27 }
0x15de   :  { %2685 = vmatmul.mubr.f32.vlgmr.msra.gmra.mrb[24].mxu0 %v3041_v27 }
0x15df   :  { %2869 = vmatpush3.bf16.msra.mxu0 %v3316_v54  ;;  %2706 = vmatprep.mubr.msk.f32.mxu0 %vm3040_vm1, %v3041_v27 }
0x15e0   :  { %2870 = vmatprep.subr.bf16.mxu0 %v3039_v17 }
0x15e3   :  { %2872 = vmatpush3.bf16.msra.mxu0 %v3331_v60 }
0x15e4   :  { %2879 = vmatprep.subr.bf16.mxu0 %v3039_v17 }
0x16a1   :  { %v2646_v2 = vpop.f32.mrb[16].mxu0  ;;  %v2666_v3 = vpop.f32.mrb[16].mxu1 }
0x16a2   :  { %v1242_v4 = vadd.f32 %v2646_v2, %v2340_v44  ;;  %v1236_v5 = vpop.f32.mrb[17].mxu0  ;;  %v1341_v6 = vpop.f32.mrb[17].mxu1 }
0x16a3   :  { %v1237_v48 = vadd.f32 %v2340_v44, %v1236_v5 }
0x16a5   :  { %v2649_v7 = vpop.f32.mrb[18].mxu0  ;;  %v2669_v8 = vpop.f32.mrb[18].mxu1 }
0x16a6   :  { %v1252_v9 = vadd.f32 %v2649_v7, %v2340_v44  ;;  %v1246_v10 = vpop.f32.mrb[19].mxu0  ;;  %v1351_v11 = vpop.f32.mrb[19].mxu1 }
0x16a7   :  { %v1247_v12 = vadd.f32 %v2340_v44, %v1246_v10 }
0x16a9   :  { %v2652_v13 = vpop.f32.mrb[20].mxu0  ;;  %v2672_v14 = vpop.f32.mrb[20].mxu1 }
0x16aa   :  { %v1262_v15 = vadd.f32 %v2652_v13, %v2340_v44  ;;  %v3364_v18 = vadd.f32 %v2672_v14, %v1247_v12  ;;  %v1256_v19 = vpop.f32.mrb[21].mxu0  ;;  %v1361_v20 = vpop.f32.mrb[21].mxu1 }
0x16ab   :  { %v1257_v61 = vadd.f32 %v2340_v44, %v1256_v19  ;;  %v3366_v21 = vadd.f32 %v1361_v20, %v1252_v9 }
0x16ac   :  { %v3368_v22 = vadd.f32 %v1351_v11, %v1262_v15 }
0x16ad   :  { %v3370_v24 = vadd.f32 %v2669_v8, %v1257_v61  ;;  %v2655_v25 = vpop.f32.mrb[22].mxu0  ;;  %v2675_v26 = vpop.f32.mrb[22].mxu1 }
0x16ae   :  { %v1272_v28 = vadd.f32 %v2655_v25, %v2340_v44  ;;  %v1454_v29 = vadd.f32 %v2675_v26, %v1237_v48  ;;  %v1266_v30 = vpop.f32.mrb[23].mxu0  ;;  %v1371_v31 = vpop.f32.mrb[23].mxu1 }
0x16af   :  { %v1267_v58 = vadd.f32 %v2340_v44, %v1266_v30  ;;  %v1556_v32 = vadd.f32 %v1371_v31, %v1242_v4 }
0x16b0   :  { %v3377_v34 = vadd.f32 %v1341_v6, %v1272_v28 }
0x16b1   :  { %v3379_v35 = vadd.f32 %v2666_v3, %v1267_v58  ;;  %v1450_v59 = vpop.f32.mrb[24].mxu0 }
0x16b2   :  { %v1451_v36 = vadd.f32 %v3375_v33, %v1450_v59  ;;  %v2686_v37 = vpop.f32.mrb[25].mxu0 }
0x16b4   :  { %1463 = vrot.lane.b32.xlu0 %v1451_v36, %s3042_s24  ;;  %v1455_v38 = vadd.f32 %v1454_v29, %v1451_v36 }
0x16b6   :  { %v2358_v39 = vmul.f32 -1.442695, %v1455_v38 }
0x16b8   :  { %2963 = vpow2.f32 %v2358_v39 }
0x16c2   :  { %v2964_v40 = vpop.eup %2963 }
0x16c3   :  { %v1459_v41 = vadd.f32 1.0, %v2964_v40 }
0x16c5   :  { %2965 = vrcp.f32 %v1459_v41 }
0x16cf   :  { %v2966_v50 = vpop.eup %2965 }
0x16d0   :  { %v1473_v51 = vsub.f32 1.0, %v2966_v50  ;;  %v1479_v52 = vmul.f32 0.0, %v2966_v50 }
0x1726   :  { %v1464_v42 = vpop.permute.xlu0 %1463 }
0x1727   :  { %v1466_v43 = vmul.f32 %v2966_v50, %v1464_v42 }
0x1729   :  { %1468 = vrot.lane.b32.xlu1 %v1466_v43, %s3042_s24 }
0x179b   :  { %v1469_v45 = vpop.permute.xlu1 %1468 }
0x179c   :  { %v1471_v46 = vadd.f32 %v1469_v45, %v1454_v29 }
0x179e   :  { %2967 = vtanh.f32 %v1471_v46 }
0x17a8   :  { %v2968_v49 = vpop.eup %2967 }
0x17a9   :  { %1475 = vrot.lane.b32.xlu0 %v2968_v49, %s3043_s25 }
0x181b   :  { %v1476_v16 = vpop.permute.xlu0 %1475 }
0x181c   :  { %v1478_v53 = vmul.f32 %v1476_v16, %v1473_v51 }
0x181e   :  { %v1480_v23 = vadd.f32 %v1479_v52, %v1478_v53 }
0x1820   :  { %1482 = vrot.lane.b32.xlu1 %v1480_v23, %s3043_s25 }
0x1892   :  { %v1483_v55 = vpop.permute.xlu1 %1482 }
0x1893   :  { %2696 = vmatmul.mubr.msk.f32.vlgmr.msra.gmra.mrb[24].mxu1 %vm52_vm0, %v1483_v55 }
0x1894   :  { %2875 = vmatpush3.bf16.msra.mxu1 %v3316_v54  ;;  %2717 = vmatprep.mubr.msk.f32.mxu1 %vm3040_vm1, %v3041_v27 }
0x1895   :  { %2876 = vmatprep.subr.bf16.mxu1 %v3039_v17 }
0x1898   :  { %2878 = vmatpush3.bf16.msra.mxu1 %v3331_v60 }
0x1899   :  { %2885 = vmatprep.subr.bf16.mxu1 %v3039_v17 }
0x1966   :  { %v1552_v56 = vpop.f32.mrb[24].mxu1 }
0x1967   :  { %v1553_v57 = vadd.f32 %v3375_v33, %v1552_v56  ;;  %v2697_v62 = vpop.f32.mrb[25].mxu1 }
0x1969   :  { %1565 = vrot.lane.b32.xlu0 %v1553_v57, %s3042_s24  ;;  %v1557_v63 = vadd.f32 %v1556_v32, %v1553_v57 }
0x196b   :  { %v2360_v0 = vmul.f32 -1.442695, %v1557_v63 }
0x196d   :  { %2969 = vpow2.f32 %v2360_v0 }
0x1977   :  { %v2970_v1 = vpop.eup %2969 }
0x1978   :  { %v1561_v47 = vadd.f32 1.0, %v2970_v1 }
0x197a   :  { %2971 = vrcp.f32 %v1561_v47 }
0x1984   :  { %v2972_v44 = vpop.eup %2971 }
0x1985   :  { %v1575_v7 = vsub.f32 1.0, %v2972_v44  ;;  %v1581_v9 = vmul.f32 %v2972_v44, %v1480_v23 }
0x19db   :  { %v1566_v2 = vpop.permute.xlu0 %1565 }
0x19dc   :  { %v1568_v3 = vmul.f32 %v2972_v44, %v1566_v2 }
0x19de   :  { %1570 = vrot.lane.b32.xlu1 %v1568_v3, %s3042_s24 }
0x1a50   :  { %v1571_v4 = vpop.permute.xlu1 %1570 }
0x1a51   :  { %v1573_v5 = vadd.f32 %v1571_v4, %v1556_v32 }
0x1a53   :  { %2973 = vtanh.f32 %v1573_v5 }
0x1a5d   :  { %v2974_v6 = vpop.eup %2973 }
0x1a5e   :  { %1577 = vrot.lane.b32.xlu0 %v2974_v6, %s3043_s25 }
0x1ad0   :  { %v1578_v8 = vpop.permute.xlu0 %1577 }
0x1ad1   :  { %v1580_v10 = vmul.f32 %v1578_v8, %v1575_v7 }
0x1ad3   :  { %v1582_v11 = vadd.f32 %v1581_v9, %v1580_v10 }
0x1ad5   :  { %1584 = vrot.lane.b32.xlu1 %v1582_v11, %s3043_s25 }
0x1b47   :  { %v1585_v12 = vpop.permute.xlu1 %1584 }
0x1b48   :  { %2707 = vmatmul.mubr.msk.f32.vlgmr.msra.gmra.mrb[26].mxu0 %vm52_vm0, %v1585_v12 }
0x1b49   :  { %2881 = vmatpush3.bf16.msra.mxu0 %v3316_v54  ;;  %2728 = vmatprep.mubr.msk.f32.mxu0 %vm3040_vm1, %v3041_v27 }
0x1b4a   :  { %2882 = vmatprep.subr.bf16.mxu0 %v3039_v17 }
0x1b4d   :  { %2884 = vmatpush3.bf16.msra.mxu0 %v3331_v60 }
0x1b4e   :  { %2891 = vmatprep.subr.bf16.mxu0 %v3039_v17 }
0x1c1b   :  { %v1654_v13 = vpop.f32.mrb[26].mxu0 }
0x1c1c   :  { %v1655_v14 = vadd.f32 %v3375_v33, %v1654_v13  ;;  %v2708_v15 = vpop.f32.mrb[27].mxu0 }
0x1c1e   :  { %1667 = vrot.lane.b32.xlu0 %v1655_v14, %s3042_s24  ;;  %v1659_v19 = vadd.f32 %v3364_v18, %v1655_v14 }
0x1c20   :  { %v2362_v20 = vmul.f32 -1.442695, %v1659_v19 }
0x1c22   :  { %2975 = vpow2.f32 %v2362_v20 }
0x1c2c   :  { %v2976_v61 = vpop.eup %2975 }
0x1c2d   :  { %v1663_v48 = vadd.f32 1.0, %v2976_v61 }
0x1c2f   :  { %2977 = vrcp.f32 %v1663_v48 }
0x1c39   :  { %v2978_v25 = vpop.eup %2977 }
0x1c3a   :  { %v1677_v58 = vsub.f32 1.0, %v2978_v25  ;;  %v1683_v59 = vmul.f32 %v2978_v25, %v1582_v11 }
0x1c90   :  { %v1668_v26 = vpop.permute.xlu0 %1667 }
0x1c91   :  { %v1670_v28 = vmul.f32 %v2978_v25, %v1668_v26 }
0x1c93   :  { %1672 = vrot.lane.b32.xlu1 %v1670_v28, %s3042_s24 }
0x1d05   :  { %v1673_v29 = vpop.permute.xlu1 %1672 }
0x1d06   :  { %v1675_v30 = vadd.f32 %v1673_v29, %v3364_v18 }
0x1d08   :  { %2979 = vtanh.f32 %v1675_v30 }
0x1d12   :  { %v2980_v31 = vpop.eup %2979 }
0x1d13   :  { %1679 = vrot.lane.b32.xlu0 %v2980_v31, %s3043_s25 }
0x1d85   :  { %v1680_v32 = vpop.permute.xlu0 %1679 }
0x1d86   :  { %v1682_v36 = vmul.f32 %v1680_v32, %v1677_v58 }
0x1d88   :  { %v1684_v37 = vadd.f32 %v1683_v59, %v1682_v36 }
0x1d8a   :  { %1686 = vrot.lane.b32.xlu1 %v1684_v37, %s3043_s25 }
0x1dfc   :  { %v1687_v38 = vpop.permute.xlu1 %1686 }
0x1dfd   :  { %2718 = vmatmul.mubr.msk.f32.vlgmr.msra.gmra.mrb[26].mxu1 %vm52_vm0, %v1687_v38 }
0x1dfe   :  { %2887 = vmatpush3.bf16.msra.mxu1 %v3316_v54  ;;  %2739 = vmatprep.mubr.msk.f32.mxu1 %vm3040_vm1, %v3041_v27 }
0x1dff   :  { %2888 = vmatprep.subr.bf16.mxu1 %v3039_v17 }
0x1e02   :  { %2890 = vmatpush3.bf16.msra.mxu1 %v3331_v60 }
0x1e03   :  { %2897 = vmatprep.subr.bf16.mxu1 %v3039_v17 }
0x1ed0   :  { %v1756_v18 = vpop.f32.mrb[26].mxu1 }
0x1ed1   :  { %v1757_v39 = vadd.f32 %v3375_v33, %v1756_v18  ;;  %v2719_v40 = vpop.f32.mrb[27].mxu1 }
0x1ed3   :  { %1769 = vrot.lane.b32.xlu0 %v1757_v39, %s3042_s24  ;;  %v1761_v41 = vadd.f32 %v3366_v21, %v1757_v39 }
0x1ed5   :  { %v2364_v50 = vmul.f32 -1.442695, %v1761_v41 }
0x1ed7   :  { %2981 = vpow2.f32 %v2364_v50 }
0x1ee1   :  { %v2982_v42 = vpop.eup %2981 }
0x1ee2   :  { %v1765_v43 = vadd.f32 1.0, %v2982_v42 }
0x1ee4   :  { %2983 = vrcp.f32 %v1765_v43 }
0x1eee   :  { %v2984_v45 = vpop.eup %2983 }
0x1eef   :  { %v1779_v53 = vsub.f32 1.0, %v2984_v45  ;;  %v1785_v55 = vmul.f32 %v2984_v45, %v1684_v37 }
0x1f45   :  { %v1770_v46 = vpop.permute.xlu0 %1769 }
0x1f46   :  { %v1772_v49 = vmul.f32 %v2984_v45, %v1770_v46 }
0x1f48   :  { %1774 = vrot.lane.b32.xlu1 %v1772_v49, %s3042_s24 }
0x1fba   :  { %v1775_v51 = vpop.permute.xlu1 %1774 }
0x1fbb   :  { %v1777_v16 = vadd.f32 %v1775_v51, %v3366_v21 }
0x1fbd   :  { %2985 = vtanh.f32 %v1777_v16 }
0x1fc7   :  { %v2986_v52 = vpop.eup %2985 }
0x1fc8   :  { %1781 = vrot.lane.b32.xlu0 %v2986_v52, %s3043_s25 }
0x203a   :  { %v1782_v23 = vpop.permute.xlu0 %1781 }
0x203b   :  { %v1784_v56 = vmul.f32 %v1782_v23, %v1779_v53 }
0x203d   :  { %v1786_v57 = vadd.f32 %v1785_v55, %v1784_v56 }
0x203f   :  { %1788 = vrot.lane.b32.xlu1 %v1786_v57, %s3043_s25 }
0x20b1   :  { %v1789_v62 = vpop.permute.xlu1 %1788 }
0x20b2   :  { %2729 = vmatmul.mubr.msk.f32.vlgmr.msra.gmra.mrb[28].mxu0 %vm52_vm0, %v1789_v62 }
0x20b3   :  { %2893 = vmatpush3.bf16.msra.mxu0 %v3316_v54  ;;  %2750 = vmatprep.mubr.msk.f32.mxu0 %vm3040_vm1, %v3041_v27 }
0x20b4   :  { %2894 = vmatprep.subr.bf16.mxu0 %v3039_v17 }
0x20b7   :  { %2896 = vmatpush3.bf16.msra.mxu0 %v3331_v60 }
0x20b8   :  { %2903 = vmatprep.subr.bf16.mxu0 %v3039_v17 }
0x2185   :  { %v1858_v21 = vpop.f32.mrb[28].mxu0 }
0x2186   :  { %v1859_v63 = vadd.f32 %v3375_v33, %v1858_v21  ;;  %v2730_v0 = vpop.f32.mrb[29].mxu0 }
0x2188   :  { %1871 = vrot.lane.b32.xlu0 %v1859_v63, %s3042_s24  ;;  %v1863_v1 = vadd.f32 %v3370_v24, %v1859_v63 }
0x218a   :  { %v2366_v47 = vmul.f32 -1.442695, %v1863_v1 }
0x218c   :  { %2987 = vpow2.f32 %v2366_v47 }
0x2196   :  { %v2988_v44 = vpop.eup %2987 }
0x2197   :  { %v1867_v2 = vadd.f32 1.0, %v2988_v44 }
0x2199   :  { %2989 = vrcp.f32 %v1867_v2 }
0x21a3   :  { %v2990_v3 = vpop.eup %2989 }
0x21a4   :  { %v1881_v9 = vsub.f32 1.0, %v2990_v3  ;;  %v1887_v11 = vmul.f32 %v2990_v3, %v1786_v57 }
0x21fa   :  { %v1872_v4 = vpop.permute.xlu0 %1871 }
0x21fb   :  { %v1874_v5 = vmul.f32 %v2990_v3, %v1872_v4  ;;  %v2196_v4 = vld [vmem:[%s3501_s1 + $0xd0] sm:$0xff] }
0x21fd   :  { %1876 = vrot.lane.b32.xlu1 %v1874_v5, %s3042_s24  ;;  %v2197_v5 = vld [vmem:[%s3501_s1 + $0xd8] sm:$0xff] }
0x226f   :  { %v1877_v6 = vpop.permute.xlu1 %1876 }
0x2270   :  { %v1879_v7 = vadd.f32 %v1877_v6, %v3370_v24 }
0x2272   :  { %2991 = vtanh.f32 %v1879_v7  ;;  %v2198_v7 = vld [vmem:[%s3501_s1 + $0xe0] sm:$0xff] }
0x227c   :  { %v2992_v8 = vpop.eup %2991 }
0x227d   :  { %1883 = vrot.lane.b32.xlu0 %v2992_v8, %s3043_s25 }
0x22ef   :  { %v1884_v10 = vpop.permute.xlu0 %1883 }
0x22f0   :  { %v1886_v12 = vmul.f32 %v1884_v10, %v1881_v9 }
0x22f2   :  { %v1888_v13 = vadd.f32 %v1887_v11, %v1886_v12 }
0x22f4   :  { %1890 = vrot.lane.b32.xlu1 %v1888_v13, %s3043_s25 }
0x2366   :  { %v1891_v14 = vpop.permute.xlu1 %1890 }
0x2367   :  { %2740 = vmatmul.mubr.msk.f32.vlgmr.msra.gmra.mrb[28].mxu1 %vm52_vm0, %v1891_v14 }
0x2368   :  { %2899 = vmatpush3.bf16.msra.mxu1 %v3316_v54  ;;  %2761 = vmatprep.mubr.msk.f32.mxu1 %vm3040_vm1, %v3041_v27 }
0x2369   :  { %2900 = vmatprep.subr.bf16.mxu1 %v3039_v17 }
0x236c   :  { %2902 = vmatpush3.bf16.msra.mxu1 %v3331_v60 }
0x243a   :  { %v1960_v24 = vpop.f32.mrb[28].mxu1 }
0x243b   :  { %v1961_v15 = vadd.f32 %v3375_v33, %v1960_v24  ;;  %v2741_v19 = vpop.f32.mrb[29].mxu1  ;;  %v2373_v24 = vld [vmem:[%s3501_s1 + $0xe8] ss:$0 sm:$0xff] }
0x243d   :  { %1973 = vrot.lane.b32.xlu0 %v1961_v15, %s3042_s24  ;;  %v1965_v20 = vadd.f32 %v3368_v22, %v1961_v15 }
0x243f   :  { %v2368_v61 = vmul.f32 -1.442695, %v1965_v20 }
0x2441   :  { %2993 = vpow2.f32 %v2368_v61 }
0x244b   :  { %v2994_v48 = vpop.eup %2993 }
0x244c   :  { %v1969_v25 = vadd.f32 1.0, %v2994_v48 }
0x244e   :  { %2995 = vrcp.f32 %v1969_v25 }
0x2458   :  { %v2996_v54 = vpop.eup %2995 }
0x2459   :  { %v1983_v31 = vsub.f32 1.0, %v2996_v54  ;;  %v1989_v32 = vmul.f32 %v2996_v54, %v1888_v13 }
0x24af   :  { %v1974_v26 = vpop.permute.xlu0 %1973 }
0x24b0   :  { %v1976_v28 = vmul.f32 %v2996_v54, %v1974_v26 }
0x24b2   :  { %1978 = vrot.lane.b32.xlu1 %v1976_v28, %s3042_s24 }
0x2524   :  { %v1979_v29 = vpop.permute.xlu1 %1978 }
0x2525   :  { %v1981_v60 = vadd.f32 %v1979_v29, %v3368_v22 }
0x2527   :  { %2997 = vtanh.f32 %v1981_v60 }
0x2531   :  { %v2998_v30 = vpop.eup %2997 }
0x2532   :  { %1985 = vrot.lane.b32.xlu0 %v2998_v30, %s3043_s25 }
0x25a4   :  { %v1986_v58 = vpop.permute.xlu0 %1985 }
0x25a5   :  { %v1988_v59 = vmul.f32 %v1986_v58, %v1983_v31 }
0x25a7   :  { %v1990_v36 = vadd.f32 %v1989_v32, %v1988_v59 }
0x25a9   :  { %1992 = vrot.lane.b32.xlu1 %v1990_v36, %s3043_s25 }
0x261b   :  { %v1993_v37 = vpop.permute.xlu1 %1992 }
0x261c   :  { %2751 = vmatmul.mubr.msk.f32.vlgmr.msra.gmra.mrb[30].mxu0 %vm52_vm0, %v1993_v37 }
0x261d   :  { %2772 = vmatprep.mubr.msk.f32.mxu0 %vm3040_vm1, %v3041_v27 }
0x26ef   :  { %v2062_v38 = vpop.f32.mrb[30].mxu0 }
0x26f0   :  { %v2063_v22 = vadd.f32 %v3375_v33, %v2062_v38  ;;  %v2752_v18 = vpop.f32.mrb[31].mxu0 }
0x26f2   :  { %2075 = vrot.lane.b32.xlu0 %v2063_v22, %s3042_s24  ;;  %v2067_v39 = vadd.f32 %v3379_v35, %v2063_v22 }
0x26f4   :  { %v2370_v40 = vmul.f32 -1.442695, %v2067_v39 }
0x26f6   :  { %2999 = vpow2.f32 %v2370_v40 }
0x2700   :  { %v3000_v41 = vpop.eup %2999 }
0x2701   :  { %v2071_v50 = vadd.f32 1.0, %v3000_v41 }
0x2703   :  { %3001 = vrcp.f32 %v2071_v50 }
0x270d   :  { %v3002_v42 = vpop.eup %3001 }
0x270e   :  { %v2085_v51 = vsub.f32 1.0, %v3002_v42  ;;  %v2091_v52 = vmul.f32 %v3002_v42, %v1990_v36 }
0x2764   :  { %v2076_v43 = vpop.permute.xlu0 %2075 }
0x2765   :  { %v2078_v45 = vmul.f32 %v3002_v42, %v2076_v43 }
0x2767   :  { %2080 = vrot.lane.b32.xlu1 %v2078_v45, %s3042_s24 }
0x27d9   :  { %v2081_v46 = vpop.permute.xlu1 %2080 }
0x27da   :  { %v2083_v27 = vadd.f32 %v2081_v46, %v3379_v35 }
0x27dc   :  { %3003 = vtanh.f32 %v2083_v27 }
0x27e6   :  { %v3004_v49 = vpop.eup %3003 }
0x27e7   :  { %2087 = vrot.lane.b32.xlu0 %v3004_v49, %s3043_s25 }
0x2859   :  { %v2088_v16 = vpop.permute.xlu0 %2087 }
0x285a   :  { %v2090_v53 = vmul.f32 %v2088_v16, %v2085_v51 }
0x285c   :  { %v2092_v23 = vadd.f32 %v2091_v52, %v2090_v53 }
0x285e   :  { %2094 = vrot.lane.b32.xlu1 %v2092_v23, %s3043_s25 }
0x28d0   :  { %v2095_v55 = vpop.permute.xlu1 %2094 }
0x28d1   :  { %2762 = vmatmul.mubr.msk.f32.vlgmr.msra.gmra.mrb[30].mxu1 %vm52_vm0, %v2095_v55 }
0x29a4   :  { %v2164_v56 = vpop.f32.mrb[30].mxu1 }
0x29a5   :  { %v2165_v57 = vadd.f32 %v3375_v33, %v2164_v56  ;;  %v2763_v62 = vpop.f32.mrb[31].mxu1  ;;  %v2195_v33 = vld [vmem:[%s3501_s1 + $0xc8] sm:$0xff] }
0x29a6   :  { %v2904_v6 = vpack.c.bf16 %v2196_v4, %v2195_v33 }
0x29a7   :  { %2177 = vrot.lane.b32.xlu0 %v2165_v57, %s3042_s24  ;;  %v2169_v35 = vadd.f32 %v3377_v34, %v2165_v57 }
0x29a8   :  { %2905 = vmatpush3.bf16.msra.mxu0 %v2904_v6 }
0x29a9   :  { %v2372_v21 = vmul.f32 -1.442695, %v2169_v35  ;;  %2906 = vmatprep.subr.bf16.mxu0 %v3039_v17 }
0x29ab   :  { %3005 = vpow2.f32 %v2372_v21 }
0x29b5   :  { %v3006_v63 = vpop.eup %3005 }
0x29b6   :  { %v2173_v0 = vadd.f32 1.0, %v3006_v63 }
0x29b8   :  { %3007 = vrcp.f32 %v2173_v0 }
0x29c2   :  { %v3008_v1 = vpop.eup %3007 }
0x29c3   :  { %v2187_v9 = vsub.f32 1.0, %v3008_v1  ;;  %v2193_v11 = vmul.f32 %v3008_v1, %v2092_v23 }
0x2a19   :  { %v2178_v47 = vpop.permute.xlu0 %2177 }
0x2a1a   :  { %v2180_v44 = vmul.f32 %v3008_v1, %v2178_v47 }
0x2a1c   :  { %2182 = vrot.lane.b32.xlu1 %v2180_v44, %s3042_s24 }
0x2a8e   :  { %v2183_v2 = vpop.permute.xlu1 %2182 }
0x2a8f   :  { %v2185_v3 = vadd.f32 %v2183_v2, %v3377_v34  ;;  %v2907_v34 = vpack.c.bf16 %v2198_v7, %v2197_v5 }
0x2a91   :  { %3009 = vtanh.f32 %v2185_v3  ;;  %2908 = vmatpush3.bf16.msra.mxu0 %v2907_v34 }
0x2a9b   :  { %v3010_v8 = vpop.eup %3009 }
0x2a9c   :  { %2189 = vrot.lane.b32.xlu0 %v3010_v8, %s3043_s25 }
0x2b0e   :  { %v2190_v10 = vpop.permute.xlu0 %2189 }
0x2b0f   :  { %v2192_v12 = vmul.f32 %v2190_v10, %v2187_v9 }
0x2b11   :  { %v2194_v13 = vadd.f32 %v2193_v11, %v2192_v12 }
0x2b13   :  { %2205 = vrot.lane.b32.xlu1 %v2194_v13, %s3043_s25  ;;  %s3044_s25 = smov [#allocation3]  }
0x2b14   :  { %s2299_s8 = sshll.u32 %s3044_s25, 4  ;;  %s2300_s8 = int_to_ptr.vmem [resolvable:$true] %s2299_s8 }
0x2b15   :  { %s3015_s1 = scalar_lea.vmem %s2300_s8, 32  ;;  %p3020_p1 = scmp.lt.s32.totalorder %s2300_s8, %s2300_s8 }
0x2b16   :  { %p3016_p0 = scmp.ne.s32.totalorder %s2300_s8, %s3015_s1  ;;  %p3021_p2 = scmp.lt.s32.totalorder %s3015_s1, %s3015_s1 }
0x2b18   :  { %p3022_p3 = por %p3021_p2, %p3020_p1 }
0x2b1a   :  { %p3023_p4 = pnand %p3022_p3, %p3016_p0 }
0x2b85   :  { %v2206_v14 = vpop.permute.xlu1 %2205 }
0x2b86   :  { %2773 = vmatmul.mubr.msk.f32.vlgmr.msra.gmra.mrb[32].mxu0 %vm52_vm0, %v2206_v14 }
0x2c59   :  { %v2275_v15 = vpop.f32.mrb[32].mxu0 }
0x2c5a   :  { %v2276_v17 = vadd.f32 %v2373_v24, %v2275_v15  ;;  %v2774_v19 = vpop.f32.mrb[33].mxu0 }
0x2c5c   :  { %v2280_v20 = vsel %vm2279_vm4, %v2276_v17, -inf }
0x2c5d   :  { %2281 = vmax.xlane.f32.xlu0 %v2280_v20 }
0x2cea   :  { %v2282_v61 = vpop.xlane.xlu0 %2281 }
0x2ceb   :  { %v2283_v48 = vsub.f32 %v2276_v17, %v2282_v61 }
0x2ced   :  { %v2284_v25 = vmul.f32 1.442695, %v2283_v48 }
0x2cef   :  { %3011 = vpow2.f32 %v2284_v25 }
0x2cf9   :  { %v3012_v54 = vpop.eup %3011 }
0x2cfa   :  { %v2286_v26 = vsel %vm2279_vm4, %v3012_v54, 0.0 }
0x2cfb   :  { %2287 = vadd.xlane.f32.xlu1 %v2286_v26 }
0x2d88   :  { %v2288_v28 = vpop.xlane.xlu1 %2287 }
0x2d89   :  { %3013 = vrcp.f32 %v2288_v28 }
0x2d93   :  { %v3014_v29 = vpop.eup %3013 }
0x2d94   :  { %v2290_v60 = vmul.f32 %v3014_v29, %v3012_v54 }
0x2d96   :  { %2292 = vst.msk [vmem:[#allocation3] sm:$0x3] %vm2291_vm5, %v2290_v60 }
0x2d97   :  { %3026 = shalt.err (!%p3023_p4)
}
0x2d98   :  { %s3027_s11 = scalar_lea.hbm %s3502_s2, 32 }
0x2d99   :  { %p3028_p5 = scmp.ne.s32.totalorder %s3502_s2, %s3027_s11  ;;  %p3031_p6 = scmp.lt.u32.totalorder %s3027_s11, %s3502_s2 }
0x2d9b   :  { %p3033_p7 = pnand %p3031_p6, %p3028_p5 }
0x2d9d   :  { %3036 = shalt.err (!%p3033_p7)
}
0x2d9e   :  { %2302 = dma.vmem_to_hbm [thread:$0]  %s2300_s8, 32, %s3502_s2, [#allocation4]  }
0x2d9f   :  { %3037 = dma.done.wait [#allocation4], 32  }
0x2da0   :  { %3038 = vsyncadd [#allocation4], 4294967264 }
0x2da1   :  { %2306 = vsyncpa [#allocation4], 1 }

</bundles_post_ra>
